<compile_context>
chip_gen: v7x
topology: tpu7x:2x2x1
jax: 0.10.0
libtpu: 0.0.40
codegen_flags: <defaults>
</compile_context>

<pallas_src>
import math
from functools import partial

import jax
import jax.numpy as jnp
from jax import lax
from jax.experimental import pallas as pl
from jax.experimental.pallas import tpu as pltpu


# ----------------------------- small helpers ------------------------------
def _bf16_dot(a, b):
    """MXU matmul with bf16 operands and f32 accumulation."""
    return jnp.dot(a.astype(jnp.bfloat16), b.astype(jnp.bfloat16),
                   preferred_element_type=jnp.float32)


def _bf16_dot_nt(a, b):
    """a[M, K] . b[N, K]^T with bf16 operands and f32 accumulation."""
    return lax.dot_general(
        a.astype(jnp.bfloat16), b.astype(jnp.bfloat16),
        dimension_numbers=(((1,), (1,)), ((), ())),
        preferred_element_type=jnp.float32)


def _layer_norm(h, g, b, eps=1e-5):
    mu = jnp.mean(h, axis=-1, keepdims=True)
    var = jnp.mean(jnp.square(h - mu), axis=-1, keepdims=True)
    return (h - mu) * lax.rsqrt(var + eps) * g + b


def _weight_spec(shape):
    """Grid-invariant weight block covering the whole (small) array.

    index_map is constant across the grid, so double-buffering buys nothing;
    request single-buffering to halve the weight VMEM footprint.
    """
    n = len(shape)
    index_map = lambda *args, n=n: (0,) * n
    try:
        return pl.BlockSpec(shape, index_map, pipeline_mode=pl.Buffered(1))
    except Exception:  # older jax without pipeline_mode support
        return pl.BlockSpec(shape, index_map)


def _vmem_limit_bytes(T, C, hidden):
    """Rough per-call VMEM footprint (f32 temporaries + pipelined act blocks)."""
    f32 = 4
    temps = f32 * T * (3 * C + T + 2 * hidden + 8 * C)   # qkv, score tile, conv bufs, LN temps
    blocks = 4 * f32 * T * C                              # double-buffered in/out activation blocks
    est = 2 * (temps + blocks)                            # 2x headroom for compiler scratch
    # clamp: never below the comfortable 32 MiB, never above v7x's 64 MiB physical.
    return int(min(64 * 2 ** 20, max(32 * 2 ** 20, est)))


# ----------------------------- fused FFT-block body ------------------------------
def _attention_ffn(x, L, num_head, ffn_kernel,
                   w_in_ref, b_in_ref, w_out_ref, b_out_ref,
                   ln0_g_ref, ln0_b_ref,
                   w_ffn0_ref, b_ffn0_ref, w_ffn1_ref, b_ffn1_ref,
                   ln1_g_ref, ln1_b_ref):
    """One FastSpeech FFT block on a [T, C] f32 tile; returns [T, C] f32."""
    T, C = x.shape
    H = num_head
    Dh = C // H
    K = ffn_kernel
    pad = (K - 1) // 2

    # length masking computed in-kernel from the SMEM scalar (no broadcast input stream)
    q_idx = lax.broadcasted_iota(jnp.int32, (T, 1), 0)
    k_idx = lax.broadcasted_iota(jnp.int32, (1, T), 1)
    mask = (q_idx < L).astype(jnp.float32)                           # [T, 1]
    key_bias = jnp.where(k_idx < L, 0.0, -1e9).astype(jnp.float32)   # [1, T]

    # ---------------- multi-head self attention ----------------
    qkv = _bf16_dot(x, w_in_ref[...]) + b_in_ref[...]                # [T, 3C]
    scale = 1.0 / math.sqrt(Dh)
    # per-head context folded straight through the matching W_out row block and
    # accumulated -> no lane-axis concat of Dh-wide chunks, one [T,T] tile at a time.
    attn = jnp.zeros((T, C), jnp.float32) + b_out_ref[...]
    # TODO(synk): at production Mel_t, switch to lax.fori_loop over heads + flash-style
    #             KV tiling so score tiles stay small and live ranges are bounded.
    for h in range(H):
        qh = qkv[:, h * Dh:(h + 1) * Dh] * scale
        kh = qkv[:, C + h * Dh:C + (h + 1) * Dh]
        vh = qkv[:, 2 * C + h * Dh:2 * C + (h + 1) * Dh]
        s = _bf16_dot_nt(qh, kh) + key_bias                          # [T, T]
        m = jnp.max(s, axis=-1, keepdims=True)
        p = jnp.exp(s - m)
        p = p * pl.reciprocal(jnp.sum(p, axis=-1, keepdims=True), approx=True)
        ctx = _bf16_dot(p, vh)                                       # [T, Dh]
        attn = attn + _bf16_dot(ctx, w_out_ref[h * Dh:(h + 1) * Dh, :])  # [T, C]
    x = _layer_norm(attn + x, ln0_g_ref[...], ln0_b_ref[...]) * mask

    # ---------------- conv FFN: per-tap matmul accumulation ----------------
    hidden = w_ffn0_ref.shape[-1]
    if pad == 0:
        xp = x
    else:
        zpad = jnp.zeros((pad, C), jnp.float32)
        xp = jnp.concatenate([zpad, x, zpad], axis=0)                # [T + 2*pad, C]
    hdn = jnp.zeros((T, hidden), jnp.float32) + b_ffn0_ref[...]
    for k in range(K):
        hdn = hdn + _bf16_dot(xp[k:k + T, :], w_ffn0_ref[k])         # tap k contraction
    hdn = jnp.maximum(hdn, 0.0) * mask

    if pad == 0:
        hp = hdn
    else:
        zpad_h = jnp.zeros((pad, hidden), jnp.float32)
        hp = jnp.concatenate([zpad_h, hdn, zpad_h], axis=0)          # [T + 2*pad, hidden]
    ffn = jnp.zeros((T, C), jnp.float32) + b_ffn1_ref[...]
    for k in range(K):
        ffn = ffn + _bf16_dot(hp[k:k + T, :], w_ffn1_ref[k])

    return _layer_norm(ffn + x, ln1_g_ref[...], ln1_b_ref[...]) * mask


# ----------------------------- kernels ------------------------------
def _fft_block_kernel(num_head, ffn_kernel,
                      len_ref, x_ref,
                      w_in_ref, b_in_ref, w_out_ref, b_out_ref,
                      ln0_g_ref, ln0_b_ref,
                      w_ffn0_ref, b_ffn0_ref, w_ffn1_ref, b_ffn1_ref,
                      ln1_g_ref, ln1_b_ref,
                      o_ref):
    b = pl.program_id(0)
    x = x_ref[0].astype(jnp.float32)                                 # [T, C]
    y = _attention_ffn(x, len_ref[b], num_head, ffn_kernel,
                       w_in_ref, b_in_ref, w_out_ref, b_out_ref,
                       ln0_g_ref, ln0_b_ref,
                       w_ffn0_ref, b_ffn0_ref, w_ffn1_ref, b_ffn1_ref,
                       ln1_g_ref, ln1_b_ref)
    o_ref[0] = y.astype(o_ref.dtype)                                 # bf16 activation stream


def _fft_block_proj_kernel(num_head, ffn_kernel,
                           len_ref, x_ref,
                           w_in_ref, b_in_ref, w_out_ref, b_out_ref,
                           ln0_g_ref, ln0_b_ref,
                           w_ffn0_ref, b_ffn0_ref, w_ffn1_ref, b_ffn1_ref,
                           ln1_g_ref, ln1_b_ref,
                           norm_g_ref, norm_b_ref, proj_wT_ref, proj_b_ref,
                           o_ref):
    """Last FFT block fused with the final LayerNorm + 1x1-conv projection."""
    b = pl.program_id(0)
    x = x_ref[0].astype(jnp.float32)                                 # [T, C]
    y = _attention_ffn(x, len_ref[b], num_head, ffn_kernel,
                       w_in_ref, b_in_ref, w_out_ref, b_out_ref,
                       ln0_g_ref, ln0_b_ref,
                       w_ffn0_ref, b_ffn0_ref, w_ffn1_ref, b_ffn1_ref,
                       ln1_g_ref, ln1_b_ref)
    yn = _layer_norm(y, norm_g_ref[...], norm_b_ref[...])
    # lane-dense output: [Tech, T] = wT[Tech, C] . yn[T, C]^T (contract over C)
    out = _bf16_dot_nt(proj_wT_ref[...], yn) + proj_b_ref[...]       # [Tech, T]
    o_ref[0] = out.astype(o_ref.dtype)


# ----------------------------- pallas_call wrapper ------------------------------
_WEIGHT_KEYS = ("w_in", "b_in", "w_out", "b_out", "ln0_g", "ln0_b",
                "w_ffn0", "b_ffn0", "w_ffn1", "b_ffn1", "ln1_g", "ln1_b")


def fft_block(x, lengths, bp, num_head, final=None):
    """One fused FFT block over x: [B, T, C] (bf16 in / bf16 out).

    If `final` is given, the final LayerNorm + projection are fused into this
    call and the output is [B, Techniques, T] f32.
    """
    B, T, C = x.shape
    K = bp["w_ffn0"].shape[0]
    hidden = bp["w_ffn0"].shape[-1]
    weights = [bp[k] for k in _WEIGHT_KEYS]

    in_specs = [pl.BlockSpec((1, T, C), lambda b, lens: (b, 0, 0))]
    in_specs += [_weight_spec(w.shape) for w in weights]

    if final is None:
        kernel = partial(_fft_block_kernel, num_head, K)
        out_shape = jax.ShapeDtypeStruct((B, T, C), jnp.bfloat16)
        out_spec = pl.BlockSpec((1, T, C), lambda b, lens: (b, 0, 0))
        extra = []
    else:
        Tech = final["proj_wT"].shape[0]
        kernel = partial(_fft_block_proj_kernel, num_head, K)
        out_shape = jax.ShapeDtypeStruct((B, Tech, T), jnp.float32)
        out_spec = pl.BlockSpec((1, Tech, T), lambda b, lens: (b, 0, 0))
        extra = [final["norm_g"], final["norm_b"], final["proj_wT"], final["proj_b"]]
        in_specs += [_weight_spec(w.shape) for w in extra]

    return pl.pallas_call(
        kernel,
        out_shape=out_shape,
        grid_spec=pltpu.PrefetchScalarGridSpec(
            num_scalar_prefetch=1,
            grid=(B,),
            in_specs=in_specs,
            out_specs=out_spec,
        ),
        compiler_params=pltpu.CompilerParams(
            dimension_semantics=("parallel",),
            vmem_limit_bytes=_vmem_limit_bytes(T, C, hidden)),
    )(lengths, x, *weights, *extra)


# ----------------------------- parameters ------------------------------
def make_fft_block_params(key, C, K):
    ks = jax.random.split(key, 4)
    s = 0.02
    hidden = 4 * C
    return dict(
        w_in=(jax.random.normal(ks[0], (C, 3 * C), jnp.float32) * s).astype(jnp.bfloat16),
        b_in=jnp.zeros((1, 3 * C), jnp.float32),
        w_out=(jax.random.normal(ks[1], (C, C), jnp.float32) * s).astype(jnp.bfloat16),
        b_out=jnp.zeros((1, C), jnp.float32),
        ln0_g=jnp.ones((1, C), jnp.float32),
        ln0_b=jnp.zeros((1, C), jnp.float32),
        # conv weights kept as [K, Cin, Cout] for the in-kernel per-tap accumulation
        w_ffn0=(jax.random.normal(ks[2], (K, C, hidden), jnp.float32) * s).astype(jnp.bfloat16),
        b_ffn0=jnp.zeros((1, hidden), jnp.float32),
        w_ffn1=(jax.random.normal(ks[3], (K, hidden, C), jnp.float32) * s).astype(jnp.bfloat16),
        b_ffn1=jnp.zeros((1, C), jnp.float32),
        ln1_g=jnp.ones((1, C), jnp.float32),
        ln1_b=jnp.zeros((1, C), jnp.float32),
    )


def init_params(key, C, K, stack, techniques):
    keys = jax.random.split(key, stack + 1)
    blocks = [make_fft_block_params(keys[i], C, K) for i in range(stack)]
    pk = jax.random.split(keys[-1], 2)
    proj_w = jax.random.normal(pk[0], (C, techniques), jnp.float32) * 0.02
    return dict(
        blocks=blocks,
        norm_g=jnp.ones((1, C), jnp.float32),
        norm_b=jnp.zeros((1, C), jnp.float32),
        proj_wT=jnp.transpose(proj_w).astype(jnp.bfloat16),   # [Tech, C]
        proj_b=jnp.zeros((techniques, 1), jnp.float32),
    )


# ----------------------------- forward ------------------------------
def tech_predictor_forward(params, encodings, lengths, num_head):
    """encodings: [B, Enc_d, Mel_t] (NCW, like PyTorch); lengths: [B] int32.

    Returns techs: [B, Techniques, Mel_t] (f32).
    """
    # bf16 activation stream between the stacked fused-block kernels
    x = jnp.transpose(encodings, (0, 2, 1)).astype(jnp.bfloat16)     # [B, T, C]
    lengths = lengths.astype(jnp.int32)
    blocks = params["blocks"]
    final = dict(norm_g=params["norm_g"], norm_b=params["norm_b"],
                 proj_wT=params["proj_wT"], proj_b=params["proj_b"])
    for i, bp in enumerate(blocks):
        is_last = i == len(blocks) - 1
        x = fft_block(x, lengths, bp, num_head, final=final if is_last else None)
    return x


# ----------------------------- main ------------------------------
if __name__ == "__main__":
    B, T = 2, 16
    ENC_SIZE = 32        # hp.Encoder.Size
    NUM_HEAD = 2         # hp.Tech_Predictor.Head
    FFN_KERNEL = 3       # hp.Tech_Predictor.FFN.Kernel_Size
    STACK = 2            # hp.Tech_Predictor.Stack
    TECHNIQUES = 8       # hp.Techniques

    key = jax.random.PRNGKey(0)
    pkey, xkey = jax.random.split(key)
    params = init_params(pkey, ENC_SIZE, FFN_KERNEL, STACK, TECHNIQUES)

    encodings = jax.random.normal(xkey, (B, ENC_SIZE, T), jnp.float32)
    lengths = jnp.array([16, 12], dtype=jnp.int32)

    techs = tech_predictor_forward(params, encodings, lengths, NUM_HEAD)
    techs = jax.block_until_ready(techs)
    assert techs.shape == (B, TECHNIQUES, T), techs.shape
    assert bool(jnp.all(jnp.isfinite(techs)))
    print("KERNEL_OK")
</pallas_src>

<mosaic_0001>
module attributes {stable_mosaic.version = 11 : i64} {
  func.func @_fft_block_kernel(%arg0: i32, %arg1: memref<2xi32, #tpu.memory_space<smem>>, %arg2: memref<1x16x32xbf16, #tpu.memory_space<vmem>>, %arg3: memref<32x96xbf16, #tpu.memory_space<vmem>>, %arg4: memref<1x96xf32, #tpu.memory_space<vmem>>, %arg5: memref<32x32xbf16, #tpu.memory_space<vmem>>, %arg6: memref<1x32xf32, #tpu.memory_space<vmem>>, %arg7: memref<1x32xf32, #tpu.memory_space<vmem>>, %arg8: memref<1x32xf32, #tpu.memory_space<vmem>>, %arg9: memref<3x32x128xbf16, #tpu.memory_space<vmem>>, %arg10: memref<1x128xf32, #tpu.memory_space<vmem>>, %arg11: memref<3x128x32xbf16, #tpu.memory_space<vmem>>, %arg12: memref<1x32xf32, #tpu.memory_space<vmem>>, %arg13: memref<1x32xf32, #tpu.memory_space<vmem>>, %arg14: memref<1x32xf32, #tpu.memory_space<vmem>>, %arg15: memref<1x16x32xbf16, #tpu.memory_space<vmem>>) attributes {dimension_semantics = [#tpu.dimension_semantics<parallel>], iteration_bounds = array<i64: 2>, scalar_prefetch = 1 : i64, scratch_operands = 0 : i64, tpu.core_type = #tpu.core_type<tc>, window_params = [{transform_indices = @transform_0, window_bounds = array<i64: 1, 16, 32>}, {pipeline_mode = #tpu.pipeline_mode<synchronous>, transform_indices = @transform_1, window_bounds = array<i64: 32, 96>}, {pipeline_mode = #tpu.pipeline_mode<synchronous>, transform_indices = @transform_2, window_bounds = array<i64: 1, 96>}, {pipeline_mode = #tpu.pipeline_mode<synchronous>, transform_indices = @transform_3, window_bounds = array<i64: 32, 32>}, {pipeline_mode = #tpu.pipeline_mode<synchronous>, transform_indices = @transform_4, window_bounds = array<i64: 1, 32>}, {pipeline_mode = #tpu.pipeline_mode<synchronous>, transform_indices = @transform_5, window_bounds = array<i64: 1, 32>}, {pipeline_mode = #tpu.pipeline_mode<synchronous>, transform_indices = @transform_6, window_bounds = array<i64: 1, 32>}, {pipeline_mode = #tpu.pipeline_mode<synchronous>, transform_indices = @transform_7, window_bounds = array<i64: 3, 32, 128>}, {pipeline_mode = #tpu.pipeline_mode<synchronous>, transform_indices = @transform_8, window_bounds = array<i64: 1, 128>}, {pipeline_mode = #tpu.pipeline_mode<synchronous>, transform_indices = @transform_9, window_bounds = array<i64: 3, 128, 32>}, {pipeline_mode = #tpu.pipeline_mode<synchronous>, transform_indices = @transform_10, window_bounds = array<i64: 1, 32>}, {pipeline_mode = #tpu.pipeline_mode<synchronous>, transform_indices = @transform_11, window_bounds = array<i64: 1, 32>}, {pipeline_mode = #tpu.pipeline_mode<synchronous>, transform_indices = @transform_12, window_bounds = array<i64: 1, 32>}, {transform_indices = @transform_13, window_bounds = array<i64: 1, 16, 32>}]} {
    %c0 = arith.constant 0 : index
    %c0_0 = arith.constant 0 : index
    %c0_1 = arith.constant 0 : index
    %0 = vector.load %arg2[%c0, %c0_0, %c0_1] : memref<1x16x32xbf16, #tpu.memory_space<vmem>>, vector<1x16x32xbf16>
    %1 = vector.shape_cast %0 : vector<1x16x32xbf16> to vector<16x32xbf16>
    %2 = arith.extf %1 : vector<16x32xbf16> to vector<16x32xf32>
    %3 = arith.index_cast %arg0 : i32 to index
    %4 = memref.load %arg1[%3] : memref<2xi32, #tpu.memory_space<smem>>
    %5 = tpu.iota {dimensions = array<i32: 0>} : vector<16x1xi32>
    %6 = tpu.iota {dimensions = array<i32: 1>} : vector<1x16xi32>
    %7 = vector.broadcast %4 : i32 to vector<16x1xi32>
    %8 = arith.cmpi slt, %5, %7 : vector<16x1xi32>
    %9 = arith.extui %8 : vector<16x1xi1> to vector<16x1xi32>
    %10 = arith.sitofp %9 : vector<16x1xi32> to vector<16x1xf32>
    %11 = vector.broadcast %4 : i32 to vector<1x16xi32>
    %12 = arith.cmpi slt, %6, %11 : vector<1x16xi32>
    %cst = arith.constant 0.000000e+00 : f32
    %cst_2 = arith.constant -1.000000e+09 : f32
    %13 = vector.broadcast %cst : f32 to vector<1x16xf32>
    %14 = vector.broadcast %cst_2 : f32 to vector<1x16xf32>
    %15 = arith.select %12, %13, %14 : vector<1x16xi1>, vector<1x16xf32>
    %c0_3 = arith.constant 0 : index
    %c0_4 = arith.constant 0 : index
    %16 = vector.load %arg3[%c0_3, %c0_4] : memref<32x96xbf16, #tpu.memory_space<vmem>>, vector<32x96xbf16>
    %17 = arith.truncf %2 : vector<16x32xf32> to vector<16x32xbf16>
    %cst_5 = arith.constant dense<0.000000e+00> : vector<16x96xf32>
    %18 = tpu.matmul %17, %16, %cst_5 {dimension_numbers = #tpu.dot_dimension_numbers<[1], [0], [0], [1], [0, 0, 1, 1], [], []>} : vector<16x32xbf16>, vector<32x96xbf16>, vector<16x96xf32> -> vector<16x96xf32>
    %c0_6 = arith.constant 0 : index
    %c0_7 = arith.constant 0 : index
    %19 = vector.load %arg4[%c0_6, %c0_7] : memref<1x96xf32, #tpu.memory_space<vmem>>, vector<1x96xf32>
    %20 = vector.broadcast %19 : vector<1x96xf32> to vector<16x96xf32>
    %21 = arith.addf %18, %20 : vector<16x96xf32>
    %cst_8 = arith.constant 0.000000e+00 : f32
    %22 = vector.broadcast %cst_8 : f32 to vector<16x32xf32>
    %c0_9 = arith.constant 0 : index
    %c0_10 = arith.constant 0 : index
    %23 = vector.load %arg6[%c0_9, %c0_10] : memref<1x32xf32, #tpu.memory_space<vmem>>, vector<1x32xf32>
    %24 = vector.broadcast %23 : vector<1x32xf32> to vector<16x32xf32>
    %25 = arith.addf %22, %24 : vector<16x32xf32>
    %26 = vector.extract_strided_slice %21 {offsets = [0, 0], sizes = [16, 16], strides = [1, 1]} : vector<16x96xf32> to vector<16x16xf32>
    %cst_11 = arith.constant 2.500000e-01 : f32
    %27 = vector.broadcast %cst_11 : f32 to vector<16x16xf32>
    %28 = arith.mulf %26, %27 : vector<16x16xf32>
    %29 = vector.extract_strided_slice %21 {offsets = [0, 32], sizes = [16, 16], strides = [1, 1]} : vector<16x96xf32> to vector<16x16xf32>
    %30 = vector.extract_strided_slice %21 {offsets = [0, 64], sizes = [16, 16], strides = [1, 1]} : vector<16x96xf32> to vector<16x16xf32>
    %31 = arith.truncf %28 : vector<16x16xf32> to vector<16x16xbf16>
    %32 = arith.truncf %29 : vector<16x16xf32> to vector<16x16xbf16>
    %cst_12 = arith.constant dense<0.000000e+00> : vector<16x16xf32>
    %33 = tpu.matmul %31, %32, %cst_12 {dimension_numbers = #tpu.dot_dimension_numbers<[1], [1], [0], [0], [0, 0, 1, 0], [], []>} : vector<16x16xbf16>, vector<16x16xbf16>, vector<16x16xf32> -> vector<16x16xf32>
    %34 = vector.broadcast %15 : vector<1x16xf32> to vector<16x16xf32>
    %35 = arith.addf %33, %34 : vector<16x16xf32>
    %cst_13 = arith.constant dense<0xFF800000> : vector<16xf32>
    %36 = vector.multi_reduction <maximumf>, %35, %cst_13 [1] : vector<16x16xf32> to vector<16xf32>
    %37 = vector.shape_cast %36 : vector<16xf32> to vector<16x1xf32>
    %38 = vector.broadcast %37 : vector<16x1xf32> to vector<16x16xf32>
    %39 = arith.subf %35, %38 : vector<16x16xf32>
    %40 = math.exp %39 : vector<16x16xf32>
    %cst_14 = arith.constant dense<0.000000e+00> : vector<16xf32>
    %41 = vector.multi_reduction <add>, %40, %cst_14 [1] : vector<16x16xf32> to vector<16xf32>
    %42 = vector.shape_cast %41 : vector<16xf32> to vector<16x1xf32>
    %43 = tpu.reciprocal %42 {approx = true} : vector<16x1xf32> -> vector<16x1xf32>
    %44 = vector.broadcast %43 : vector<16x1xf32> to vector<16x16xf32>
    %45 = arith.mulf %40, %44 : vector<16x16xf32>
    %46 = arith.truncf %45 : vector<16x16xf32> to vector<16x16xbf16>
    %47 = arith.truncf %30 : vector<16x16xf32> to vector<16x16xbf16>
    %cst_15 = arith.constant dense<0.000000e+00> : vector<16x16xf32>
    %48 = tpu.matmul %46, %47, %cst_15 {dimension_numbers = #tpu.dot_dimension_numbers<[1], [0], [0], [1], [0, 0, 1, 1], [], []>} : vector<16x16xbf16>, vector<16x16xbf16>, vector<16x16xf32> -> vector<16x16xf32>
    %c0_16 = arith.constant 0 : index
    %c0_17 = arith.constant 0 : index
    %49 = vector.load %arg5[%c0_16, %c0_17] : memref<32x32xbf16, #tpu.memory_space<vmem>>, vector<16x32xbf16>
    %50 = arith.truncf %48 : vector<16x16xf32> to vector<16x16xbf16>
    %cst_18 = arith.constant dense<0.000000e+00> : vector<16x32xf32>
    %51 = tpu.matmul %50, %49, %cst_18 {dimension_numbers = #tpu.dot_dimension_numbers<[1], [0], [0], [1], [0, 0, 1, 1], [], []>} : vector<16x16xbf16>, vector<16x32xbf16>, vector<16x32xf32> -> vector<16x32xf32>
    %52 = arith.addf %25, %51 : vector<16x32xf32>
    %53 = vector.extract_strided_slice %21 {offsets = [0, 16], sizes = [16, 16], strides = [1, 1]} : vector<16x96xf32> to vector<16x16xf32>
    %cst_19 = arith.constant 2.500000e-01 : f32
    %54 = vector.broadcast %cst_19 : f32 to vector<16x16xf32>
    %55 = arith.mulf %53, %54 : vector<16x16xf32>
    %56 = vector.extract_strided_slice %21 {offsets = [0, 48], sizes = [16, 16], strides = [1, 1]} : vector<16x96xf32> to vector<16x16xf32>
    %57 = vector.extract_strided_slice %21 {offsets = [0, 80], sizes = [16, 16], strides = [1, 1]} : vector<16x96xf32> to vector<16x16xf32>
    %58 = arith.truncf %55 : vector<16x16xf32> to vector<16x16xbf16>
    %59 = arith.truncf %56 : vector<16x16xf32> to vector<16x16xbf16>
    %cst_20 = arith.constant dense<0.000000e+00> : vector<16x16xf32>
    %60 = tpu.matmul %58, %59, %cst_20 {dimension_numbers = #tpu.dot_dimension_numbers<[1], [1], [0], [0], [0, 0, 1, 0], [], []>} : vector<16x16xbf16>, vector<16x16xbf16>, vector<16x16xf32> -> vector<16x16xf32>
    %61 = vector.broadcast %15 : vector<1x16xf32> to vector<16x16xf32>
    %62 = arith.addf %60, %61 : vector<16x16xf32>
    %cst_21 = arith.constant dense<0xFF800000> : vector<16xf32>
    %63 = vector.multi_reduction <maximumf>, %62, %cst_21 [1] : vector<16x16xf32> to vector<16xf32>
    %64 = vector.shape_cast %63 : vector<16xf32> to vector<16x1xf32>
    %65 = vector.broadcast %64 : vector<16x1xf32> to vector<16x16xf32>
    %66 = arith.subf %62, %65 : vector<16x16xf32>
    %67 = math.exp %66 : vector<16x16xf32>
    %cst_22 = arith.constant dense<0.000000e+00> : vector<16xf32>
    %68 = vector.multi_reduction <add>, %67, %cst_22 [1] : vector<16x16xf32> to vector<16xf32>
    %69 = vector.shape_cast %68 : vector<16xf32> to vector<16x1xf32>
    %70 = tpu.reciprocal %69 {approx = true} : vector<16x1xf32> -> vector<16x1xf32>
    %71 = vector.broadcast %70 : vector<16x1xf32> to vector<16x16xf32>
    %72 = arith.mulf %67, %71 : vector<16x16xf32>
    %73 = arith.truncf %72 : vector<16x16xf32> to vector<16x16xbf16>
    %74 = arith.truncf %57 : vector<16x16xf32> to vector<16x16xbf16>
    %cst_23 = arith.constant dense<0.000000e+00> : vector<16x16xf32>
    %75 = tpu.matmul %73, %74, %cst_23 {dimension_numbers = #tpu.dot_dimension_numbers<[1], [0], [0], [1], [0, 0, 1, 1], [], []>} : vector<16x16xbf16>, vector<16x16xbf16>, vector<16x16xf32> -> vector<16x16xf32>
    %c16 = arith.constant 16 : index
    %c0_24 = arith.constant 0 : index
    %76 = vector.load %arg5[%c16, %c0_24] : memref<32x32xbf16, #tpu.memory_space<vmem>>, vector<16x32xbf16>
    %77 = arith.truncf %75 : vector<16x16xf32> to vector<16x16xbf16>
    %cst_25 = arith.constant dense<0.000000e+00> : vector<16x32xf32>
    %78 = tpu.matmul %77, %76, %cst_25 {dimension_numbers = #tpu.dot_dimension_numbers<[1], [0], [0], [1], [0, 0, 1, 1], [], []>} : vector<16x16xbf16>, vector<16x32xbf16>, vector<16x32xf32> -> vector<16x32xf32>
    %79 = arith.addf %52, %78 : vector<16x32xf32>
    %80 = arith.addf %79, %2 : vector<16x32xf32>
    %c0_26 = arith.constant 0 : index
    %c0_27 = arith.constant 0 : index
    %81 = vector.load %arg7[%c0_26, %c0_27] : memref<1x32xf32, #tpu.memory_space<vmem>>, vector<1x32xf32>
    %c0_28 = arith.constant 0 : index
    %c0_29 = arith.constant 0 : index
    %82 = vector.load %arg8[%c0_28, %c0_29] : memref<1x32xf32, #tpu.memory_space<vmem>>, vector<1x32xf32>
    %cst_30 = arith.constant dense<0.000000e+00> : vector<16xf32>
    %83 = vector.multi_reduction <add>, %80, %cst_30 [1] : vector<16x32xf32> to vector<16xf32>
    %84 = vector.shape_cast %83 : vector<16xf32> to vector<16x1xf32>
    %cst_31 = arith.constant 3.200000e+01 : f32
    %85 = vector.broadcast %cst_31 : f32 to vector<16x1xf32>
    %86 = arith.divf %84, %85 : vector<16x1xf32>
    %87 = vector.broadcast %86 : vector<16x1xf32> to vector<16x32xf32>
    %88 = arith.subf %80, %87 : vector<16x32xf32>
    %89 = arith.mulf %88, %88 : vector<16x32xf32>
    %cst_32 = arith.constant dense<0.000000e+00> : vector<16xf32>
    %90 = vector.multi_reduction <add>, %89, %cst_32 [1] : vector<16x32xf32> to vector<16xf32>
    %91 = vector.shape_cast %90 : vector<16xf32> to vector<16x1xf32>
    %cst_33 = arith.constant 3.200000e+01 : f32
    %92 = vector.broadcast %cst_33 : f32 to vector<16x1xf32>
    %93 = arith.divf %91, %92 : vector<16x1xf32>
    %94 = vector.broadcast %86 : vector<16x1xf32> to vector<16x32xf32>
    %95 = arith.subf %80, %94 : vector<16x32xf32>
    %cst_34 = arith.constant 9.99999974E-6 : f32
    %96 = vector.broadcast %cst_34 : f32 to vector<16x1xf32>
    %97 = arith.addf %93, %96 : vector<16x1xf32>
    %98 = math.rsqrt %97 : vector<16x1xf32>
    %99 = vector.broadcast %98 : vector<16x1xf32> to vector<16x32xf32>
    %100 = arith.mulf %95, %99 : vector<16x32xf32>
    %101 = vector.broadcast %81 : vector<1x32xf32> to vector<16x32xf32>
    %102 = arith.mulf %100, %101 : vector<16x32xf32>
    %103 = vector.broadcast %82 : vector<1x32xf32> to vector<16x32xf32>
    %104 = arith.addf %102, %103 : vector<16x32xf32>
    %105 = vector.broadcast %10 : vector<16x1xf32> to vector<16x32xf32>
    %106 = arith.mulf %104, %105 : vector<16x32xf32>
    %cst_35 = arith.constant 0.000000e+00 : f32
    %107 = vector.broadcast %cst_35 : f32 to vector<1x32xf32>
    %108 = tpu.concatenate %107, %106, %107 in 0 : vector<1x32xf32>, vector<16x32xf32>, vector<1x32xf32> -> vector<18x32xf32>
    %cst_36 = arith.constant 0.000000e+00 : f32
    %109 = vector.broadcast %cst_36 : f32 to vector<16x128xf32>
    %c0_37 = arith.constant 0 : index
    %c0_38 = arith.constant 0 : index
    %110 = vector.load %arg10[%c0_37, %c0_38] : memref<1x128xf32, #tpu.memory_space<vmem>>, vector<1x128xf32>
    %111 = vector.broadcast %110 : vector<1x128xf32> to vector<16x128xf32>
    %112 = arith.addf %109, %111 : vector<16x128xf32>
    %113 = vector.extract_strided_slice %108 {offsets = [0, 0], sizes = [16, 32], strides = [1, 1]} : vector<18x32xf32> to vector<16x32xf32>
    %c0_39 = arith.constant 0 : index
    %c0_40 = arith.constant 0 : index
    %c0_41 = arith.constant 0 : index
    %114 = vector.load %arg9[%c0_39, %c0_40, %c0_41] : memref<3x32x128xbf16, #tpu.memory_space<vmem>>, vector<1x32x128xbf16>
    %115 = vector.shape_cast %114 : vector<1x32x128xbf16> to vector<32x128xbf16>
    %116 = arith.truncf %113 : vector<16x32xf32> to vector<16x32xbf16>
    %cst_42 = arith.constant dense<0.000000e+00> : vector<16x128xf32>
    %117 = tpu.matmul %116, %115, %cst_42 {dimension_numbers = #tpu.dot_dimension_numbers<[1], [0], [0], [1], [0, 0, 1, 1], [], []>} : vector<16x32xbf16>, vector<32x128xbf16>, vector<16x128xf32> -> vector<16x128xf32>
    %118 = arith.addf %112, %117 : vector<16x128xf32>
    %119 = vector.extract_strided_slice %108 {offsets = [1, 0], sizes = [16, 32], strides = [1, 1]} : vector<18x32xf32> to vector<16x32xf32>
    %c1 = arith.constant 1 : index
    %c0_43 = arith.constant 0 : index
    %c0_44 = arith.constant 0 : index
    %120 = vector.load %arg9[%c1, %c0_43, %c0_44] : memref<3x32x128xbf16, #tpu.memory_space<vmem>>, vector<1x32x128xbf16>
    %121 = vector.shape_cast %120 : vector<1x32x128xbf16> to vector<32x128xbf16>
    %122 = arith.truncf %119 : vector<16x32xf32> to vector<16x32xbf16>
    %cst_45 = arith.constant dense<0.000000e+00> : vector<16x128xf32>
    %123 = tpu.matmul %122, %121, %cst_45 {dimension_numbers = #tpu.dot_dimension_numbers<[1], [0], [0], [1], [0, 0, 1, 1], [], []>} : vector<16x32xbf16>, vector<32x128xbf16>, vector<16x128xf32> -> vector<16x128xf32>
    %124 = arith.addf %118, %123 : vector<16x128xf32>
    %125 = vector.extract_strided_slice %108 {offsets = [2, 0], sizes = [16, 32], strides = [1, 1]} : vector<18x32xf32> to vector<16x32xf32>
    %c2 = arith.constant 2 : index
    %c0_46 = arith.constant 0 : index
    %c0_47 = arith.constant 0 : index
    %126 = vector.load %arg9[%c2, %c0_46, %c0_47] : memref<3x32x128xbf16, #tpu.memory_space<vmem>>, vector<1x32x128xbf16>
    %127 = vector.shape_cast %126 : vector<1x32x128xbf16> to vector<32x128xbf16>
    %128 = arith.truncf %125 : vector<16x32xf32> to vector<16x32xbf16>
    %cst_48 = arith.constant dense<0.000000e+00> : vector<16x128xf32>
    %129 = tpu.matmul %128, %127, %cst_48 {dimension_numbers = #tpu.dot_dimension_numbers<[1], [0], [0], [1], [0, 0, 1, 1], [], []>} : vector<16x32xbf16>, vector<32x128xbf16>, vector<16x128xf32> -> vector<16x128xf32>
    %130 = arith.addf %124, %129 : vector<16x128xf32>
    %cst_49 = arith.constant 0.000000e+00 : f32
    %131 = vector.broadcast %cst_49 : f32 to vector<16x128xf32>
    %132 = arith.maximumf %130, %131 : vector<16x128xf32>
    %133 = vector.broadcast %10 : vector<16x1xf32> to vector<16x128xf32>
    %134 = arith.mulf %132, %133 : vector<16x128xf32>
    %cst_50 = arith.constant 0.000000e+00 : f32
    %135 = vector.broadcast %cst_50 : f32 to vector<1x128xf32>
    %136 = tpu.concatenate %135, %134, %135 in 0 : vector<1x128xf32>, vector<16x128xf32>, vector<1x128xf32> -> vector<18x128xf32>
    %cst_51 = arith.constant 0.000000e+00 : f32
    %137 = vector.broadcast %cst_51 : f32 to vector<16x32xf32>
    %c0_52 = arith.constant 0 : index
    %c0_53 = arith.constant 0 : index
    %138 = vector.load %arg12[%c0_52, %c0_53] : memref<1x32xf32, #tpu.memory_space<vmem>>, vector<1x32xf32>
    %139 = vector.broadcast %138 : vector<1x32xf32> to vector<16x32xf32>
    %140 = arith.addf %137, %139 : vector<16x32xf32>
    %141 = vector.extract_strided_slice %136 {offsets = [0, 0], sizes = [16, 128], strides = [1, 1]} : vector<18x128xf32> to vector<16x128xf32>
    %c0_54 = arith.constant 0 : index
    %c0_55 = arith.constant 0 : index
    %c0_56 = arith.constant 0 : index
    %142 = vector.load %arg11[%c0_54, %c0_55, %c0_56] : memref<3x128x32xbf16, #tpu.memory_space<vmem>>, vector<1x128x32xbf16>
    %143 = vector.shape_cast %142 : vector<1x128x32xbf16> to vector<128x32xbf16>
    %144 = arith.truncf %141 : vector<16x128xf32> to vector<16x128xbf16>
    %cst_57 = arith.constant dense<0.000000e+00> : vector<16x32xf32>
    %145 = tpu.matmul %144, %143, %cst_57 {dimension_numbers = #tpu.dot_dimension_numbers<[1], [0], [0], [1], [0, 0, 1, 1], [], []>} : vector<16x128xbf16>, vector<128x32xbf16>, vector<16x32xf32> -> vector<16x32xf32>
    %146 = arith.addf %140, %145 : vector<16x32xf32>
    %147 = vector.extract_strided_slice %136 {offsets = [1, 0], sizes = [16, 128], strides = [1, 1]} : vector<18x128xf32> to vector<16x128xf32>
    %c1_58 = arith.constant 1 : index
    %c0_59 = arith.constant 0 : index
    %c0_60 = arith.constant 0 : index
    %148 = vector.load %arg11[%c1_58, %c0_59, %c0_60] : memref<3x128x32xbf16, #tpu.memory_space<vmem>>, vector<1x128x32xbf16>
    %149 = vector.shape_cast %148 : vector<1x128x32xbf16> to vector<128x32xbf16>
    %150 = arith.truncf %147 : vector<16x128xf32> to vector<16x128xbf16>
    %cst_61 = arith.constant dense<0.000000e+00> : vector<16x32xf32>
    %151 = tpu.matmul %150, %149, %cst_61 {dimension_numbers = #tpu.dot_dimension_numbers<[1], [0], [0], [1], [0, 0, 1, 1], [], []>} : vector<16x128xbf16>, vector<128x32xbf16>, vector<16x32xf32> -> vector<16x32xf32>
    %152 = arith.addf %146, %151 : vector<16x32xf32>
    %153 = vector.extract_strided_slice %136 {offsets = [2, 0], sizes = [16, 128], strides = [1, 1]} : vector<18x128xf32> to vector<16x128xf32>
    %c2_62 = arith.constant 2 : index
    %c0_63 = arith.constant 0 : index
    %c0_64 = arith.constant 0 : index
    %154 = vector.load %arg11[%c2_62, %c0_63, %c0_64] : memref<3x128x32xbf16, #tpu.memory_space<vmem>>, vector<1x128x32xbf16>
    %155 = vector.shape_cast %154 : vector<1x128x32xbf16> to vector<128x32xbf16>
    %156 = arith.truncf %153 : vector<16x128xf32> to vector<16x128xbf16>
    %cst_65 = arith.constant dense<0.000000e+00> : vector<16x32xf32>
    %157 = tpu.matmul %156, %155, %cst_65 {dimension_numbers = #tpu.dot_dimension_numbers<[1], [0], [0], [1], [0, 0, 1, 1], [], []>} : vector<16x128xbf16>, vector<128x32xbf16>, vector<16x32xf32> -> vector<16x32xf32>
    %158 = arith.addf %152, %157 : vector<16x32xf32>
    %159 = arith.addf %158, %106 : vector<16x32xf32>
    %c0_66 = arith.constant 0 : index
    %c0_67 = arith.constant 0 : index
    %160 = vector.load %arg13[%c0_66, %c0_67] : memref<1x32xf32, #tpu.memory_space<vmem>>, vector<1x32xf32>
    %c0_68 = arith.constant 0 : index
    %c0_69 = arith.constant 0 : index
    %161 = vector.load %arg14[%c0_68, %c0_69] : memref<1x32xf32, #tpu.memory_space<vmem>>, vector<1x32xf32>
    %cst_70 = arith.constant dense<0.000000e+00> : vector<16xf32>
    %162 = vector.multi_reduction <add>, %159, %cst_70 [1] : vector<16x32xf32> to vector<16xf32>
    %163 = vector.shape_cast %162 : vector<16xf32> to vector<16x1xf32>
    %cst_71 = arith.constant 3.200000e+01 : f32
    %164 = vector.broadcast %cst_71 : f32 to vector<16x1xf32>
    %165 = arith.divf %163, %164 : vector<16x1xf32>
    %166 = vector.broadcast %165 : vector<16x1xf32> to vector<16x32xf32>
    %167 = arith.subf %159, %166 : vector<16x32xf32>
    %168 = arith.mulf %167, %167 : vector<16x32xf32>
    %cst_72 = arith.constant dense<0.000000e+00> : vector<16xf32>
    %169 = vector.multi_reduction <add>, %168, %cst_72 [1] : vector<16x32xf32> to vector<16xf32>
    %170 = vector.shape_cast %169 : vector<16xf32> to vector<16x1xf32>
    %cst_73 = arith.constant 3.200000e+01 : f32
    %171 = vector.broadcast %cst_73 : f32 to vector<16x1xf32>
    %172 = arith.divf %170, %171 : vector<16x1xf32>
    %173 = vector.broadcast %165 : vector<16x1xf32> to vector<16x32xf32>
    %174 = arith.subf %159, %173 : vector<16x32xf32>
    %cst_74 = arith.constant 9.99999974E-6 : f32
    %175 = vector.broadcast %cst_74 : f32 to vector<16x1xf32>
    %176 = arith.addf %172, %175 : vector<16x1xf32>
    %177 = math.rsqrt %176 : vector<16x1xf32>
    %178 = vector.broadcast %177 : vector<16x1xf32> to vector<16x32xf32>
    %179 = arith.mulf %174, %178 : vector<16x32xf32>
    %180 = vector.broadcast %160 : vector<1x32xf32> to vector<16x32xf32>
    %181 = arith.mulf %179, %180 : vector<16x32xf32>
    %182 = vector.broadcast %161 : vector<1x32xf32> to vector<16x32xf32>
    %183 = arith.addf %181, %182 : vector<16x32xf32>
    %184 = vector.broadcast %10 : vector<16x1xf32> to vector<16x32xf32>
    %185 = arith.mulf %183, %184 : vector<16x32xf32>
    %186 = arith.truncf %185 : vector<16x32xf32> to vector<16x32xbf16>
    %c0_75 = arith.constant 0 : index
    %c0_76 = arith.constant 0 : index
    %c0_77 = arith.constant 0 : index
    %187 = vector.load %arg15[%c0_75, %c0_76, %c0_77] : memref<1x16x32xbf16, #tpu.memory_space<vmem>>, vector<1x16x32xbf16>
    %188 = vector.shape_cast %187 : vector<1x16x32xbf16> to vector<16x32xbf16>
    %189 = vector.shape_cast %186 : vector<16x32xbf16> to vector<1x16x32xbf16>
    tpu.vector_store %arg15[%c0_75, %c0_76, %c0_77], %189 {strides = array<i32>} : memref<1x16x32xbf16, #tpu.memory_space<vmem>>, vector<1x16x32xbf16>,
    return
  }
  func.func @transform_0(%arg0: i32, %arg1: memref<2xi32, #tpu.memory_space<smem>>) -> (i32, i32, i32) {
    %c0_i32 = arith.constant 0 : i32
    %c0_i32_0 = arith.constant 0 : i32
    %c0_i32_1 = arith.constant 0 : i32
    return %arg0, %c0_i32, %c0_i32_0 : i32, i32, i32
  }
  func.func @transform_1(%arg0: i32, %arg1: memref<2xi32, #tpu.memory_space<smem>>) -> (i32, i32) {
    %c0_i32 = arith.constant 0 : i32
    %c0_i32_0 = arith.constant 0 : i32
    %c0_i32_1 = arith.constant 0 : i32
    return %c0_i32, %c0_i32_0 : i32, i32
  }
  func.func @transform_2(%arg0: i32, %arg1: memref<2xi32, #tpu.memory_space<smem>>) -> (i32, i32) {
    %c0_i32 = arith.constant 0 : i32
    %c0_i32_0 = arith.constant 0 : i32
    %c0_i32_1 = arith.constant 0 : i32
    return %c0_i32, %c0_i32_0 : i32, i32
  }
  func.func @transform_3(%arg0: i32, %arg1: memref<2xi32, #tpu.memory_space<smem>>) -> (i32, i32) {
    %c0_i32 = arith.constant 0 : i32
    %c0_i32_0 = arith.constant 0 : i32
    %c0_i32_1 = arith.constant 0 : i32
    return %c0_i32, %c0_i32_0 : i32, i32
  }
  func.func @transform_4(%arg0: i32, %arg1: memref<2xi32, #tpu.memory_space<smem>>) -> (i32, i32) {
    %c0_i32 = arith.constant 0 : i32
    %c0_i32_0 = arith.constant 0 : i32
    %c0_i32_1 = arith.constant 0 : i32
    return %c0_i32, %c0_i32_0 : i32, i32
  }
  func.func @transform_5(%arg0: i32, %arg1: memref<2xi32, #tpu.memory_space<smem>>) -> (i32, i32) {
    %c0_i32 = arith.constant 0 : i32
    %c0_i32_0 = arith.constant 0 : i32
    %c0_i32_1 = arith.constant 0 : i32
    return %c0_i32, %c0_i32_0 : i32, i32
  }
  func.func @transform_6(%arg0: i32, %arg1: memref<2xi32, #tpu.memory_space<smem>>) -> (i32, i32) {
    %c0_i32 = arith.constant 0 : i32
    %c0_i32_0 = arith.constant 0 : i32
    %c0_i32_1 = arith.constant 0 : i32
    return %c0_i32, %c0_i32_0 : i32, i32
  }
  func.func @transform_7(%arg0: i32, %arg1: memref<2xi32, #tpu.memory_space<smem>>) -> (i32, i32, i32) {
    %c0_i32 = arith.constant 0 : i32
    %c0_i32_0 = arith.constant 0 : i32
    %c0_i32_1 = arith.constant 0 : i32
    %c0_i32_2 = arith.constant 0 : i32
    return %c0_i32, %c0_i32_0, %c0_i32_1 : i32, i32, i32
  }
  func.func @transform_8(%arg0: i32, %arg1: memref<2xi32, #tpu.memory_space<smem>>) -> (i32, i32) {
    %c0_i32 = arith.constant 0 : i32
    %c0_i32_0 = arith.constant 0 : i32
    %c0_i32_1 = arith.constant 0 : i32
    return %c0_i32, %c0_i32_0 : i32, i32
  }
  func.func @transform_9(%arg0: i32, %arg1: memref<2xi32, #tpu.memory_space<smem>>) -> (i32, i32, i32) {
    %c0_i32 = arith.constant 0 : i32
    %c0_i32_0 = arith.constant 0 : i32
    %c0_i32_1 = arith.constant 0 : i32
    %c0_i32_2 = arith.constant 0 : i32
    return %c0_i32, %c0_i32_0, %c0_i32_1 : i32, i32, i32
  }
  func.func @transform_10(%arg0: i32, %arg1: memref<2xi32, #tpu.memory_space<smem>>) -> (i32, i32) {
    %c0_i32 = arith.constant 0 : i32
    %c0_i32_0 = arith.constant 0 : i32
    %c0_i32_1 = arith.constant 0 : i32
    return %c0_i32, %c0_i32_0 : i32, i32
  }
  func.func @transform_11(%arg0: i32, %arg1: memref<2xi32, #tpu.memory_space<smem>>) -> (i32, i32) {
    %c0_i32 = arith.constant 0 : i32
    %c0_i32_0 = arith.constant 0 : i32
    %c0_i32_1 = arith.constant 0 : i32
    return %c0_i32, %c0_i32_0 : i32, i32
  }
  func.func @transform_12(%arg0: i32, %arg1: memref<2xi32, #tpu.memory_space<smem>>) -> (i32, i32) {
    %c0_i32 = arith.constant 0 : i32
    %c0_i32_0 = arith.constant 0 : i32
    %c0_i32_1 = arith.constant 0 : i32
    return %c0_i32, %c0_i32_0 : i32, i32
  }
  func.func @transform_13(%arg0: i32, %arg1: memref<2xi32, #tpu.memory_space<smem>>) -> (i32, i32, i32) {
    %c0_i32 = arith.constant 0 : i32
    %c0_i32_0 = arith.constant 0 : i32
    %c0_i32_1 = arith.constant 0 : i32
    return %arg0, %c0_i32, %c0_i32_0 : i32, i32, i32
  }
}

</mosaic_0001>

<bundles_post_ra>
// kernel: tpu_custom_call.1
= control target key start
LH: loop header
LB: loop body
LE: loop exit
PB: predicated region body
PF: predicated region fallthrough
CT: control target
= control target key end

     0   :  { %s2656_s0 = inlined_call_operand.vmem [shape: s32[2], index: 0, kind: input, shape index: {}]   ;;  %s2657_s1 = inlined_call_operand.vmem [shape: bf16[2,16,32], index: 1, kind: input, shape index: {}]   ;;  %s2658_s2 = inlined_call_operand.vmem [shape: bf16[32,96], index: 2, kind: input, shape index: {}]   ;;  %s2659_s3 = inlined_call_operand.vmem [shape: f32[1,96], index: 3, kind: input, shape index: {}]   ;;  %s2660_s4 = inlined_call_operand.vmem [shape: bf16[32,32], index: 4, kind: input, shape index: {}]   ;;  %s2661_s5 = inlined_call_operand.vmem [shape: f32[1,32], index: 5, kind: input, shape index: {}]   ;;  %s2662_s6 = inlined_call_operand.vmem [shape: f32[1,32], index: 6, kind: input, shape index: {}]   ;;  %s2663_s7 = inlined_call_operand.vmem [shape: f32[1,32], index: 7, kind: input, shape index: {}]   ;;  %s2664_s8 = inlined_call_operand.vmem [shape: bf16[3,32,128], index: 8, kind: input, shape index: {}]   ;;  %s2665_s9 = inlined_call_operand.vmem [shape: f32[1,128], index: 9, kind: input, shape index: {}]   ;;  %s2666_s10 = inlined_call_operand.vmem [shape: bf16[3,128,32], index: 10, kind: input, shape index: {}]   ;;  %s2667_s11 = inlined_call_operand.vmem [shape: f32[1,32], index: 11, kind: input, shape index: {}]   ;;  %s2668_s12 = inlined_call_operand.vmem [shape: f32[1,32], index: 12, kind: input, shape index: {}]   ;;  %s2669_s13 = inlined_call_operand.vmem [shape: f32[1,32], index: 13, kind: input, shape index: {}]   ;;  %s2670_s14 = inlined_call_operand.hbm [shape: bf16[2,16,32], index: 14, kind: output, shape index: {}]  }
   0x1   :  { %2672 = sst [smem:[#allocation8_spill]] %s2657_s1  ;;  %s19_s15 = sshll.u32 %s2656_s0, 4  ;;  %s20_s15 = int_to_ptr.vmem [resolvable:$true] %s19_s15 }
   0x2   :  { %2673 = sst [smem:[#allocation9_spill]] %s2658_s2  ;;  %s2097_s16 = scalar_lea.vmem %s20_s15, 16 }
   0x3   :  { %p2098_p0 = scmp.ne.s32.totalorder %s20_s15, %s2097_s16  ;;  %p2102_p1 = scmp.lt.s32.totalorder %s20_s15, %s20_s15 }
   0x4   :  { %p2103_p2 = scmp.lt.s32.totalorder %s2097_s16, %s2097_s16 }
   0x6   :  { %p2104_p3 = por %p2103_p2, %p2102_p1 }
   0x8   :  { %p2105_p4 = pnand %p2104_p3, %p2098_p0 }
   0xa   :  { %2108 = shalt.err (!%p2105_p4)  }
   0xb   :  { %s2175_s17 = smov [#allocation3]  }
   0xc   :  { %22 = dma.vmem_to_smem %s20_s15, 16, %s2175_s17, [#allocation2] }
   0xd   :  { %2153 = dma.done.wait [#allocation2], 16 }
   0xe   :  { %2154 = vsyncadd [#allocation2], 4294967280 }
   0xf   :  { %24 = sfence }
  0x10   :  { %25 = vsyncpa [#allocation5], 0 }
  0x11   :  { %27 = vsyncpa [#allocation5 + $0x1], 0  ;;  %s2265_s18 = smov 0   ;;  %s2267_s19 = smov 0  }
  0x12   :  { %s2269_s0 = smov 0   ;;  %s2271_s20 = smov 0  }
  0x13 LB: > { %s2286_s21 = sadd.s32 4294967295, %s2173_s20   ;;  %s1681_s22 = sadd.s32 4294967294, %s2173_s20   ;;  %s2173_s20 = sphi %s2271_s20, %s2682_s20   ;;  %s2169_s0 = sphi %s2269_s0, %s2681_s0   ;;  %s2165_s19 = sphi %s2267_s19, %s2680_s19   ;;  %s2161_s18 = sphi %s2265_s18, %s2679_s18  }
  0x14   : > { %s2290_s23 = sadd.s32 1, %s2173_s20   ;;  %s318_s24 = sadd.s32 1, %s2169_s0 }
  0x15   : > { %s315_s25 = ssub.s32 %s2173_s20, %s2290_s23  ;;  %p328_p5 = scmp.ne.s32.totalorder %s2169_s0, %s2165_s19 }
  0x16   : > { %p316_p6 = scmp.eq.s32.totalorder %s315_s25, 0  ;;  %p329_p7 = scmp.eq.s32.totalorder %s2286_s21, 1 }
  0x17   : > { %p334_p8 = scmp.ne.s32.totalorder %s2165_s19, %s2161_s18  ;;  %p335_p9 = scmp.eq.s32.totalorder %s1681_s22, 1 }
  0x18   : > { %s2301_s26 = scalar_select %p316_p6, %s2169_s0, %s318_s24  }
  0x19   : > { %p2303_p10 = por %p329_p7, %p328_p5  ;;  %p2307_p11 = por %p335_p9, %p334_p8 }
  0x1a   : > { %p1684_p12 = scmp.ge.s32.totalorder %s2173_s20, 1  ;;  %p397_p13 = scmp.lt.s32.totalorder %s2173_s20, 3 }
  0x1c   : > { %p398_p0 = pnand %p1684_p12, %p397_p13 }
  0x1d   : > { %s2676_s2 = sld [smem:[#allocation9_spill]] (!%p398_p0)  ;;  %v2176_v1 = vmov (!%p398_p0), 0.0   ;;  %vm2177_vm0 = vmmov (!%p398_p0), 0   ;;  %p441_p1 = scmp.lt.s32.totalorder (!%p398_p0), %s2286_s21, 1  ;;  %vm494_vm1 = vcmask (!%p398_p0), 261120   ;;  %v452_v9 = vlaneseq (!%p398_p0)  ;;  %v2040_v53 = vld [vmem:[%s2660_s4] sm:$0xff] (!%p398_p0)  }
  0x1e   : > { %401 = sbr.rel (%p398_p0) target bundleno = 3049 (0xbe9), region = 72  ;;  %1849 = vmatprep.subr.bf16.mxu1 (!%p398_p0), %v2176_v1  ;;  %1863 = vmatprep.subr.bf16.mxu0 (!%p398_p0), %v2176_v1  ;;  %s2677_s1 = sld [smem:[#allocation8_spill]] (!%p398_p0)  ;;  %v1690_v4 = vld [vmem:[%s2659_s3] ss:$0 sm:$0xff] (!%p398_p0)  ;;  %vm554_vm4 = vcmask (!%p398_p0), 130048   ;;  %vm955_vm6 = vcmask (!%p398_p0), 1040384  }
  0x1f   : > { %1853 = vmatprep.mubr.msk.bf16.mxu1 (!%p398_p0), %vm2177_vm0, %v2176_v1  ;;  %1865 = vmatprep.mubr.msk.bf16.mxu0 (!%p398_p0), %vm2177_vm0, %v2176_v1  ;;  %s451_s16 = sld [smem:[#allocation3 + %s2286_s21]] (!%p398_p0)  ;;  %v2342_v12 = vshrl.u32 (!%p398_p0), %v452_v9, 7  ;;  %v456_v21 = vand.u32 (!%p398_p0), 127, %v452_v9  ;;  %v2179_v22 = vmov (!%p398_p0), -1e+09   ;;  %s2181_s24 = smov (!%p398_p0), 80   ;;  %vm1733_vm9 = vmneg (!%p398_p0), %vm955_vm6 }
  0x20   : > { %s2182_s25 = smov (!%p398_p0), 112   ;;  %s2183_s15 = smov (!%p398_p0), 48   ;;  %vm1041_vm7 = vsmask.f32 (!%p398_p0), 7424  ;;  %vm1118_vm8 = vcmask (!%p398_p0), 1046528   ;;  %vm2184_vm10 = vmmov (!%p398_p0), 1  }
  0x21   : > { %v2347_v16 = vadd.s32 (!%p398_p0), 8, %v2342_v12  ;;  %vm1734_vm11 = vmpackc.low (!%p398_p0), %vm2184_vm10, %vm1733_vm9  ;;  %vm1602_vm12 = vcmask (!%p398_p0), 257024  }
  0x23   : > { %v2037_v0 = vld [vmem:[%s2676_s2] sm:$0xff] (!%p398_p0)   ;;  %v2038_v2 = vld [vmem:[%s2676_s2 + $0x8] sm:$0xff] (!%p398_p0)  }
  0x24   : > { %1850 = vmatpush3.bf16.msra.mxu1 (!%p398_p0), %v2037_v0 }
  0x25   : > { %1851 = vmatprep.subr.bf16.mxu1 %v2176_v1  ;;  %s442_s17 = scalar_select %p441_p1, %s2286_s21, 1  ;;  %v2350_v18 = vstv %s451_s16 }
  0x26   : > { %vm458_vm2 = vcmp.lt.s32.totalorder %v2342_v12, %v2350_v18  ;;  %vm459_vm3 = vcmp.lt.s32.totalorder %v2347_v16, %v2350_v18  ;;  %vm464_vm5 = vcmp.lt.s32.totalorder %v456_v21, %v2350_v18 }
  0x27   : > { %s1794_s22 = sshll.u32 %s442_s17, 3  ;;  %s2178_s17 = smov 96   ;;  %v2362_v23 = vsel %vm464_vm5, 0.0, %v2179_v22 }
  0x28   : > { %1852 = vmatpush3.bf16.msra.mxu1 %v2038_v2  ;;  %s445_s29 = scalar_lea.vmem %s2677_s1, %s1794_s22  ;;  %s2671_s22 = smov 64  }
  0x29   : > { %1857 = vmatprep.subr.bf16.mxu1 %v2176_v1  ;;  %v2332_v3 = vld [vmem:[%s445_s29] sm:$0xff]   ;;  %s438_s29 = sand.u32 1, %s2165_s19  }
  0x2a   : > { %s1685_s30 = sshll.u32 %s438_s29, 3  ;;  %s2613_s1 = scalar_lea.sflag [#allocation5], %s438_s29 }
  0x2b   : > { %1854 = vmatmul.mubr.msk.bf16.vlgmr.msra.gmra.mrb[0].mxu1 %vm494_vm1, %v2332_v3  ;;  %s440_s16 = scalar_lea.vmem [#allocation4], %s1685_s30  ;;  %s2185_s30 = smov [#allocation4]  }
  0x2c   : > { %1859 = vmatprep.mubr.msk.bf16.mxu1 %vm2177_vm0, %v2176_v1  ;;  %s2113_s2 = sshll.u32 %s2185_s30, 4  ;;  %s2114_s2 = int_to_ptr.vmem [resolvable:$false] %s2113_s2 }
  0xfe   : > { %v532_v5 = vpop.f32.mrb[0].mxu1 }
  0xff   : > { %v533_v6 = vadd.f32 %v1690_v4, %v532_v5  ;;  %v1855_v7 = vpop.f32.mrb[1].mxu1 }
 0x100   : > { %v535_v8 = vpop.f32.mrb[2].mxu1 }
 0x101   : > { %v536_v10 = vadd.f32 %v1690_v4, %v535_v8  ;;  %v1856_v11 = vpop.f32.mrb[3].mxu1  ;;  %v547_v13 = vmul.f32 0.25, %v533_v6 }
 0x103   : > { %v548_v14 = vmul.f32 0.25, %v536_v10  ;;  %v2344_v15 = vpack.c.bf16 %v536_v10, %v533_v6 }
 0x105   : > { %v549_v17 = vpack.c.bf16 %v548_v14, %v547_v13  ;;  %552 = vrot.lane.b32.xlu0 %v2344_v15, %s2178_s17  ;;  %s1619_s17 = sshll.u32 %s440_s16, 4  ;;  %s2611_s17 = int_to_ptr.vmem [resolvable:$true] %s1619_s17 }
 0x106   : > { %p2116_p5 = scmp.lt.s32.totalorder %s2611_s17, %s2114_s2 }
 0x177   : > { %v553_v19 = vpop.permute.xlu0 %552 }
 0x178   : > { %v559_v20 = vsel %vm554_vm4, %v553_v19, 0  ;;  %v2041_v19 = vld [vmem:[%s2660_s4 + $0x8] sm:$0xff]  }
 0x179   : > { %1858 = vmatpush3.bf16.xpose.msra.mxu1 %v559_v20 }
 0x17a   : > { %1869 = vmatprep.subr.bf16.mxu1 %v2176_v1 }
 0x180   : > { %1860 = vmatmul.mubr.msk.bf16.vlgmr.msra.gmra.mrb[4].mxu1 %vm554_vm4, %v549_v17 }
 0x181   : > { %1871 = vmatprep.mubr.msk.bf16.mxu1 %vm2177_vm0, %v2176_v1  ;;  %1870 = vmatpush3.bf16.msra.mxu1 %v2040_v53 }
 0x182   : > { %1881 = vmatprep.subr.bf16.mxu1 %v2176_v1 }
 0x253   : > { %v595_v24 = vpop.f32.mrb[4].mxu1 }
 0x254   : > { %v596_v25 = vadd.f32 %v595_v24, %v2362_v23  ;;  %v1861_v26 = vpop.f32.mrb[5].mxu1 }
 0x255   : > { %v598_v27 = vpop.f32.mrb[6].mxu1 }
 0x256   : > { %v599_v28 = vadd.f32 %v598_v27, %v2362_v23  ;;  %v1862_v29 = vpop.f32.mrb[7].mxu1  ;;  %v602_v30 = vsel %vm554_vm4, %v596_v25, -inf }
 0x257   : > { %603 = vmax.xlane.f32.xlu0 %v602_v30 }
 0x258   : > { %v605_v31 = vsel %vm554_vm4, %v599_v28, -inf }
 0x259   : > { %606 = vmax.xlane.f32.xlu1 %v605_v31 }
 0x26a   : > { %625 = vrot.lane.b32.xlu1 %v2344_v15, %s2671_s22  ;;  %s2115_s22 = scalar_lea.vmem %s2114_s2, 256 }
 0x2e4   : > { %v604_v32 = vpop.xlane.xlu0 %603 }
 0x2e5   : > { %v608_v33 = vsub.f32 %v596_v25, %v604_v32 }
 0x2e6   : > { %v607_v34 = vpop.xlane.xlu1 %606 }
 0x2e7   : > { %v610_v35 = vmul.f32 1.442695, %v608_v33  ;;  %v609_v36 = vsub.f32 %v599_v28, %v607_v34 }
 0x2e9   : > { %2073 = vpow2.f32 %v610_v35  ;;  %v612_v37 = vmul.f32 1.442695, %v609_v36  ;;  %v1695_v36 = vld [vmem:[%s2661_s5] ss:$0 sm:$0xff] }
 0x2ea   : > { %v626_v38 = vpop.permute.xlu1 %625 }
 0x2eb   : > { %2075 = vpow2.f32 %v612_v37  ;;  %1864 = vmatpush3.bf16.msra.mxu0 %v626_v38  ;;  %v449_v38 = vunpack.c.l.bf16 %v2332_v3 }
 0x2ec   : > { %1875 = vmatprep.subr.bf16.mxu0 %v2176_v1 }
 0x2f3   : > { %v2074_v39 = vpop.eup %2073 }
 0x2f4   : > { %v614_v40 = vsel %vm554_vm4, %v2074_v39, 0.0 }
 0x2f5   : > { %v2076_v41 = vpop.eup %2075  ;;  %615 = vadd.xlane.f32.xlu1 %v614_v40 }
 0x2f6   : > { %v617_v42 = vsel %vm554_vm4, %v2076_v41, 0.0 }
 0x2f9   : > { %618 = vadd.xlane.f32.xlu1 %v617_v42 }
 0x30a   : > { %730 = vrot.lane.b32.xlu1 %v2344_v15, %s2181_s24 }
 0x30e   : > { %728 = vrot.lane.b32.xlu1 %v549_v17, %s2182_s25 }
 0x382   : > { %v616_v43 = vpop.xlane.xlu1 %615 }
 0x383   : > { %2077 = vrcp.f32 %v616_v43  ;;  %v450_v43 = vunpack.c.h.bf16 %v2332_v3 }
 0x386   : > { %v619_v44 = vpop.xlane.xlu1 %618 }
 0x387   : > { %2079 = vrcp.f32 %v619_v44 }
 0x38a   : > { %v731_v49 = vpop.permute.xlu1 %730 }
 0x38b   : > { %v736_v51 = vsel %vm554_vm4, %v731_v49, 0 }
 0x38d   : > { %v2078_v45 = vpop.eup %2077 }
 0x38e   : > { %v622_v47 = vmul.f32 %v2078_v45, %v2074_v39  ;;  %v729_v52 = vpop.permute.xlu1 %728 }
 0x391   : > { %v2080_v46 = vpop.eup %2079 }
 0x392   : > { %v623_v48 = vmul.f32 %v2080_v46, %v2076_v41 }
 0x394   : > { %v624_v50 = vpack.c.bf16 %v623_v48, %v622_v47 }
 0x396   : > { %1866 = vmatmul.mubr.msk.bf16.vlgmr.msra.gmra.mrb[0].mxu0 %vm554_vm4, %v624_v50 }
 0x397   : > { %1876 = vmatpush3.bf16.xpose.msra.mxu0 %v736_v51  ;;  %1877 = vmatprep.mubr.msk.bf16.mxu0 %vm2177_vm0, %v2176_v1 }
 0x398   : > { %1887 = vmatprep.subr.bf16.mxu0 %v2176_v1 }
 0x39e   : > { %1878 = vmatmul.mubr.msk.bf16.vlgmr.msra.gmra.mrb[4].mxu0 %vm554_vm4, %v729_v52 }
 0x39f   : > { %1889 = vmatprep.mubr.msk.bf16.mxu0 %vm2177_vm0, %v2176_v1  ;;  %1888 = vmatpush3.bf16.msra.mxu0 %v2041_v19 }
 0x3a0   : > { %1917 = vmatprep.subr.bf16.mxu0 %v2176_v1 }
 0x469   : > { %v665_v54 = vpop.f32.mrb[0].mxu0 }
 0x46a   : > { %v1867_v55 = vpop.f32.mrb[1].mxu0 }
 0x46b   : > { %v668_v56 = vpop.f32.mrb[2].mxu0 }
 0x46c   : > { %v674_v57 = vpack.c.bf16 %v668_v56, %v665_v54  ;;  %v1868_v58 = vpop.f32.mrb[3].mxu0 }
 0x46e   : > { %1872 = vmatmul.mubr.msk.bf16.vlgmr.msra.gmra.mrb[8].mxu1 %vm554_vm4, %v674_v57 }
 0x46f   : > { %1883 = vmatprep.mubr.msk.bf16.mxu1 %vm2177_vm0, %v2176_v1 }
 0x471   : > { %v772_v59 = vpop.f32.mrb[4].mxu0 }
 0x472   : > { %v773_v60 = vadd.f32 %v772_v59, %v2362_v23  ;;  %v1879_v61 = vpop.f32.mrb[5].mxu0 }
 0x473   : > { %v775_v62 = vpop.f32.mrb[6].mxu0  ;;  %v2043_v61 = vld [vmem:[%s2664_s8 + $0x8] sm:$0xff]  }
 0x474   : > { %v776_v63 = vadd.f32 %v775_v62, %v2362_v23  ;;  %v1880_v0 = vpop.f32.mrb[7].mxu0  ;;  %v779_v2 = vsel %vm554_vm4, %v773_v60, -inf  ;;  %v2048_v62 = vld [vmem:[%s2666_s10] sm:$0xff]  }
 0x475   : > { %780 = vmax.xlane.f32.xlu0 %v779_v2  ;;  %v2050_v0 = vld [vmem:[%s2666_s10 + $0x10] sm:$0xff]   ;;  %v2052_v2 = vld [vmem:[%s2666_s10 + $0x18] sm:$0xff]  }
 0x476   : > { %v782_v4 = vsel %vm554_vm4, %v776_v63, -inf }
 0x477   : > { %783 = vmax.xlane.f32.xlu1 %v782_v4  ;;  %v2054_v4 = vld [vmem:[%s2666_s10 + $0x20] sm:$0xff]  }
 0x502   : > { %v781_v5 = vpop.xlane.xlu0 %780 }
 0x503   : > { %v785_v6 = vsub.f32 %v773_v60, %v781_v5  ;;  %v2042_v60 = vld [vmem:[%s2664_s8] sm:$0xff]  }
 0x504   : > { %v784_v7 = vpop.xlane.xlu1 %783 }
 0x505   : > { %v787_v8 = vmul.f32 1.442695, %v785_v6  ;;  %v786_v9 = vsub.f32 %v776_v63, %v784_v7  ;;  %v2049_v63 = vld [vmem:[%s2666_s10 + $0x8] sm:$0xff]  }
 0x507   : > { %2081 = vpow2.f32 %v787_v8  ;;  %v789_v10 = vmul.f32 1.442695, %v786_v9 }
 0x509   : > { %2083 = vpow2.f32 %v789_v10 }
 0x511   : > { %v2082_v11 = vpop.eup %2081 }
 0x512   : > { %v791_v13 = vsel %vm554_vm4, %v2082_v11, 0.0 }
 0x513   : > { %v2084_v14 = vpop.eup %2083  ;;  %792 = vadd.xlane.f32.xlu0 %v791_v13  ;;  %v1704_v13 = vld [vmem:[%s2662_s6] ss:$0 sm:$0xff] }
 0x514   : > { %v794_v17 = vsel %vm554_vm4, %v2084_v14, 0.0 }
 0x517   : > { %795 = vadd.xlane.f32.xlu0 %v794_v17  ;;  %v1705_v17 = vld [vmem:[%s2663_s7] ss:$0 sm:$0xff] }
 0x52d   : > { %802 = vrot.lane.b32.xlu0 %v2344_v15, %s2183_s15  ;;  %s1797_s15 = sshll.u32 %s2286_s21, 7  ;;  %s2109_s21 = scalar_lea.vmem %s2611_s17, 128 }
 0x52e   : > { %s2609_s25 = scalar_lea.hbm %s2670_s14, %s1797_s15  ;;  %p2110_p2 = scmp.ne.s32.totalorder %s2611_s17, %s2109_s21 }
 0x52f   : > { %p2117_p6 = scmp.lt.s32.totalorder %s2115_s22, %s2109_s21 }
 0x530   : > { %p2111_p3 = pnand %p2110_p2, %p2303_p10 }
 0x531   : > { %p2118_p7 = por %p2117_p6, %p2116_p5 }
 0x532   : > { %p2112_p4 = pneg %p2111_p3 }
 0x534   : > { %p2119_p8 = pnand %p2118_p7, %p2112_p4 }
 0x541   : > { %v718_v20 = vpop.f32.mrb[8].mxu1 }
 0x542   : > { %v1873_v21 = vpop.f32.mrb[9].mxu1  ;;  %v725_v37 = vadd.f32 %v1695_v36, %v718_v20 }
 0x543   : > { %v721_v22 = vpop.f32.mrb[10].mxu1  ;;  %v2454_v21 = vsel %vm458_vm2, 1.0, %v2176_v1 }
 0x544   : > { %v1874_v23 = vpop.f32.mrb[11].mxu1  ;;  %v726_v40 = vadd.f32 %v1695_v36, %v721_v22 }
 0x5a0   : > { %v793_v24 = vpop.xlane.xlu0 %792 }
 0x5a1   : > { %2085 = vrcp.f32 %v793_v24 }
 0x5a4   : > { %v796_v25 = vpop.xlane.xlu0 %795 }
 0x5a5   : > { %2087 = vrcp.f32 %v796_v25 }
 0x5a8   : > { %v803_v26 = vpop.permute.xlu0 %802 }
 0x5a9   : > { %1882 = vmatpush3.bf16.msra.mxu1 %v803_v26  ;;  %v2463_v26 = vsel %vm459_vm3, 1.0, %v2176_v1 }
 0x5aa   : > { %1893 = vmatprep.subr.bf16.mxu1 %v2176_v1 }
 0x5ab   : > { %v2086_v15 = vpop.eup %2085 }
 0x5ac   : > { %v799_v28 = vmul.f32 %v2086_v15, %v2082_v11 }
 0x5af   : > { %v2088_v27 = vpop.eup %2087 }
 0x5b0   : > { %v800_v29 = vmul.f32 %v2088_v27, %v2084_v14 }
 0x5b2   : > { %v801_v30 = vpack.c.bf16 %v800_v29, %v799_v28 }
 0x5b4   : > { %1884 = vmatmul.mubr.msk.bf16.vlgmr.msra.gmra.mrb[12].mxu1 %vm554_vm4, %v801_v30 }
 0x5b5   : > { %1897 = vmatprep.mubr.msk.bf16.mxu1 %vm2177_vm0, %v2176_v1  ;;  %1894 = vmatpush3.bf16.msra.mxu1 %v2042_v60 }
 0x5b6   : > { %1895 = vmatprep.subr.bf16.mxu1 %v2176_v1 }
 0x5b9   : > { %1896 = vmatpush3.bf16.msra.mxu1 %v2043_v61 }
 0x5ba   : > { %1901 = vmatprep.subr.bf16.mxu1 %v2176_v1 }
 0x687   : > { %v842_v31 = vpop.f32.mrb[12].mxu1 }
 0x688   : > { %v1885_v32 = vpop.f32.mrb[13].mxu1 }
 0x689   : > { %v845_v33 = vpop.f32.mrb[14].mxu1 }
 0x68a   : > { %v851_v34 = vpack.c.bf16 %v845_v33, %v842_v31  ;;  %v1886_v35 = vpop.f32.mrb[15].mxu1  ;;  %v2044_v31 = vld [vmem:[%s2664_s8 + $0x10] sm:$0xff]   ;;  %v2045_v33 = vld [vmem:[%s2664_s8 + $0x18] sm:$0xff]  }
 0x68c   : > { %1890 = vmatmul.mubr.msk.bf16.vlgmr.msra.gmra.mrb[8].mxu0 %vm554_vm4, %v851_v34 }
 0x68d   : > { %1933 = vmatprep.mubr.msk.bf16.mxu0 %vm2177_vm0, %v2176_v1  ;;  %1918 = vmatpush3.bf16.msra.mxu0 %v2048_v62 }
 0x68e   : > { %1919 = vmatprep.subr.bf16.mxu0 %v2176_v1 }
 0x691   : > { %1920 = vmatpush3.bf16.msra.mxu0 %v2049_v63 }
 0x692   : > { %1921 = vmatprep.subr.bf16.mxu0 %v2176_v1 }
 0x695   : > { %1922 = vmatpush3.bf16.msra.mxu0 %v2050_v0 }
 0x696   : > { %1923 = vmatprep.subr.bf16.mxu0 %v2176_v1 }
 0x699   : > { %1924 = vmatpush3.bf16.msra.mxu0 %v2052_v2 }
 0x69a   : > { %1925 = vmatprep.subr.bf16.mxu0 %v2176_v1 }
 0x69d   : > { %1926 = vmatpush3.bf16.msra.mxu0 %v2054_v4 }
 0x69e   : > { %1927 = vmatprep.subr.bf16.mxu0 %v2176_v1 }
 0x75f   : > { %v895_v39 = vpop.f32.mrb[8].mxu0 }
 0x760   : > { %v902_v41 = vadd.f32 %v895_v39, %v725_v37  ;;  %v1891_v42 = vpop.f32.mrb[9].mxu0 }
 0x761   : > { %v898_v44 = vpop.f32.mrb[10].mxu0  ;;  %v2047_v42 = vld [vmem:[%s2664_s8 + $0x28] sm:$0xff]  }
 0x762   : > { %v903_v45 = vadd.f32 %v898_v44, %v726_v40  ;;  %v1892_v46 = vpop.f32.mrb[11].mxu0  ;;  %v904_v47 = vadd.f32 %v902_v41, %v449_v38  ;;  %v2046_v40 = vld [vmem:[%s2664_s8 + $0x20] sm:$0xff]  }
 0x764   : > { %v908_v48 = vsel %vm494_vm1, %v904_v47, 0.0  ;;  %v905_v49 = vadd.f32 %v903_v45, %v450_v43  ;;  %v2051_v45 = vld [vmem:[%s2666_s10 + $0x40] sm:$0xff]  }
 0x765   : > { %909 = vadd.xlane.f32.xlu0 %v908_v48  ;;  %v2055_v48 = vld [vmem:[%s2666_s10 + $0x50] sm:$0xff]  }
 0x766   : > { %v911_v50 = vsel %vm494_vm1, %v905_v49, 0.0 }
 0x767   : > { %912 = vadd.xlane.f32.xlu1 %v911_v50  ;;  %v2057_v50 = vld [vmem:[%s2666_s10 + $0x58] sm:$0xff]  }
 0x7f2   : > { %v910_v51 = vpop.xlane.xlu0 %909 }
 0x7f3   : > { %v915_v52 = vmul.f32 0.03125, %v910_v51  ;;  %v2058_v51 = vld [vmem:[%s2666_s10 + $0x30] sm:$0xff]  }
 0x7f4   : > { %v913_v53 = vpop.xlane.xlu1 %912 }
 0x7f5   : > { %v917_v54 = vsub.f32 %v904_v47, %v915_v52  ;;  %v916_v55 = vmul.f32 0.03125, %v913_v53  ;;  %v2053_v47 = vld [vmem:[%s2666_s10 + $0x48] sm:$0xff]   ;;  %v2059_v52 = vld [vmem:[%s2666_s10 + $0x60] sm:$0xff]   ;;  %v2060_v53 = vld [vmem:[%s2666_s10 + $0x38] sm:$0xff]  }
 0x7f7   : > { %v918_v56 = vsub.f32 %v905_v49, %v916_v55  ;;  %v919_v57 = vmul.f32 %v917_v54, %v917_v54  ;;  %v2056_v49 = vld [vmem:[%s2666_s10 + $0x28] sm:$0xff]   ;;  %v2062_v55 = vld [vmem:[%s2666_s10 + $0x70] sm:$0xff]  }
 0x7f8   : > { %1928 = vmatpush3.bf16.msra.mxu0 %v2056_v49 }
 0x7f9   : > { %v921_v3 = vsel %vm494_vm1, %v919_v57, 0.0  ;;  %v920_v58 = vmul.f32 %v918_v56, %v918_v56  ;;  %1929 = vmatprep.subr.bf16.mxu0 %v2176_v1  ;;  %v1706_v57 = vld [vmem:[%s2665_s9] ss:$0 sm:$0xff] }
 0x7fa   : > { %922 = vadd.xlane.f32.xlu1 %v921_v3 }
 0x7fb   : > { %v924_v59 = vsel %vm494_vm1, %v920_v58, 0.0 }
 0x7fc   : > { %1930 = vmatpush3.bf16.msra.mxu0 %v2058_v51 }
 0x7fd   : > { %1931 = vmatprep.subr.bf16.mxu0 %v2176_v1 }
 0x7fe   : > { %925 = vadd.xlane.f32.xlu1 %v924_v59 }
 0x800   : > { %1932 = vmatpush3.bf16.msra.mxu0 %v2060_v53 }
 0x801   : > { %1957 = vmatprep.subr.bf16.mxu0 %v2176_v1 }
 0x887   : > { %v923_v5 = vpop.xlane.xlu1 %922 }
 0x888   : > { %v927_v6 = vmul.f32 0.03125, %v923_v5 }
 0x88a   : > { %v929_v7 = vadd.f32 1e-05, %v927_v6 }
 0x88b   : > { %v926_v8 = vpop.xlane.xlu1 %925 }
 0x88c   : > { %2089 = vrsqrt.f32 %v929_v7  ;;  %v928_v9 = vmul.f32 0.03125, %v926_v8 }
 0x88e   : > { %v930_v10 = vadd.f32 1e-05, %v928_v9 }
 0x890   : > { %2091 = vrsqrt.f32 %v930_v10  ;;  %v2063_v10 = vld [vmem:[%s2666_s10 + $0x80] sm:$0xff]  }
 0x896   : > { %v2090_v11 = vpop.eup %2089 }
 0x897   : > { %v933_v14 = vmul.f32 %v2090_v11, %v917_v54  ;;  %v2061_v54 = vld [vmem:[%s2666_s10 + $0x68] sm:$0xff]  }
 0x899   : > { %v941_v19 = vmul.f32 %v1704_v13, %v933_v14 }
 0x89a   : > { %v2092_v20 = vpop.eup %2091 }
 0x89b   : > { %v949_v22 = vadd.f32 %v1705_v17, %v941_v19  ;;  %v934_v23 = vmul.f32 %v2092_v20, %v918_v56  ;;  %v2064_v56 = vld [vmem:[%s2666_s10 + $0x78] sm:$0xff]  }
 0x89d   : > { %v942_v24 = vmul.f32 %v1704_v13, %v934_v23  ;;  %v2457_v25 = vmul.f32 %v2454_v21, %v949_v22  ;;  %v2065_v22 = vld [vmem:[%s2666_s10 + $0x88] sm:$0xff]  }
 0x89f   : > { %v950_v15 = vadd.f32 %v1705_v17, %v942_v24  ;;  %v956_v12 = vrot.slane %v2457_v25, 7 }
 0x8a1   : > { %v2466_v27 = vmul.f32 %v2463_v26, %v950_v15  ;;  %v962_v30 = vsel %vm955_vm6, 0.0, %v956_v12 }
 0x8a3   : > { %v957_v28 = vrot.slane %v2466_v27, 7 }
 0x8a5   : > { %v958_v29 = vsel %vm955_vm6, %v956_v12, %v957_v28  ;;  %v963_v18 = vsel %vm955_vm6, %v957_v28, 0.0 }
 0x8a6   : > { %v976_v16 = vpack.c.bf16 %v958_v29, %v962_v30  ;;  %v1040_v34 = vpack.c.bf16 %v963_v18, %v963_v18  ;;  %v2066_v30 = vld [vmem:[%s2666_s10 + $0x90] sm:$0xff]   ;;  %v2068_v18 = vld [vmem:[%s2666_s10 + $0xa0] sm:$0xff]  }
 0x8a8   : > { %1898 = vmatmul.mubr.msk.bf16.vlgmr.msra.gmra.mrb[16].mxu1 %vm494_vm1, %v976_v16  ;;  %v1044_v32 = vshll.u32 %v976_v16, 16  ;;  %v1042_v36 = vshrl.u32 %v976_v16, 16  ;;  %v1049_v37 = vshll.u32 %v1040_v34, 16  ;;  %v1119_v43 = vrot.slane %v976_v16, 1  ;;  %v2067_v16 = vld [vmem:[%s2666_s10 + $0x98] sm:$0xff]  }
 0x8a9   : > { %1902 = vmatpush3.bf16.msra.mxu1 %v2044_v31  ;;  %1905 = vmatprep.mubr.msk.bf16.mxu1 %vm2177_vm0, %v2176_v1  ;;  %v1120_v44 = vrot.slane %v1040_v34, 1  ;;  %v2071_v34 = vld [vmem:[%s2666_s10 + $0xb8] sm:$0xff]  }
 0x8aa   : > { %1903 = vmatprep.subr.bf16.mxu1 %v2176_v1  ;;  %v1046_v35 = vrot.slane %v1044_v32, 1  ;;  %v1051_v39 = vrot.slane %v1049_v37, 1  ;;  %v2069_v32 = vld [vmem:[%s2666_s10 + $0xa8] sm:$0xff]  }
 0x8ab   : > { %v1121_v46 = vsel %vm1118_vm8, %v1119_v43, %v1120_v44 }
 0x8ac   : > { %v1047_v38 = vor.u32 %v1046_v35, %v1042_v36 }
 0x8ad   : > { %1904 = vmatpush3.bf16.msra.mxu1 %v2045_v33  ;;  %v2070_v33 = vld [vmem:[%s2666_s10 + $0xb0] sm:$0xff]  }
 0x8ae   : > { %1909 = vmatprep.subr.bf16.mxu1 %v2176_v1  ;;  %v1052_v41 = vsel %vm1041_vm7, %v1047_v38, %v1051_v39  ;;  %v1724_v38 = vld [vmem:[%s2667_s11] ss:$0 sm:$0xff] }
 0x8b4   : > { %1906 = vmatmul.mubr.msk.bf16.vlgmr.msra.gmra.mrb[16].mxu1 %vm494_vm1, %v1052_v41 }
 0x8b5   : > { %1910 = vmatpush3.bf16.msra.mxu1 %v2046_v40  ;;  %1913 = vmatprep.mubr.msk.bf16.mxu1 %vm2177_vm0, %v2176_v1 }
 0x8b6   : > { %1911 = vmatprep.subr.bf16.mxu1 %v2176_v1 }
 0x8b9   : > { %1912 = vmatpush3.bf16.msra.mxu1 %v2047_v42 }
 0x8ba   : > { %1937 = vmatprep.subr.bf16.mxu1 %v2176_v1 }
 0x8c0   : > { %1914 = vmatmul.mubr.msk.bf16.vlgmr.msra.gmra.mrb[16].mxu1 %vm494_vm1, %v1121_v46 }
 0x8c1   : > { %1938 = vmatpush3.bf16.msra.mxu1 %v2051_v45  ;;  %1953 = vmatprep.mubr.msk.bf16.mxu1 %vm2177_vm0, %v2176_v1 }
 0x8c2   : > { %1939 = vmatprep.subr.bf16.mxu1 %v2176_v1 }
 0x8c5   : > { %1940 = vmatpush3.bf16.msra.mxu1 %v2053_v47 }
 0x8c6   : > { %1941 = vmatprep.subr.bf16.mxu1 %v2176_v1 }
 0x8c9   : > { %1942 = vmatpush3.bf16.msra.mxu1 %v2055_v48 }
 0x8ca   : > { %1943 = vmatprep.subr.bf16.mxu1 %v2176_v1 }
 0x8cd   : > { %1944 = vmatpush3.bf16.msra.mxu1 %v2057_v50 }
 0x8ce   : > { %1945 = vmatprep.subr.bf16.mxu1 %v2176_v1 }
 0x8d1   : > { %1946 = vmatpush3.bf16.msra.mxu1 %v2059_v52 }
 0x8d2   : > { %1947 = vmatprep.subr.bf16.mxu1 %v2176_v1 }
 0x8d5   : > { %1948 = vmatpush3.bf16.msra.mxu1 %v2061_v54 }
 0x8d6   : > { %1949 = vmatprep.subr.bf16.mxu1 %v2176_v1 }
 0x8d9   : > { %1950 = vmatpush3.bf16.msra.mxu1 %v2062_v55 }
 0x8da   : > { %1951 = vmatprep.subr.bf16.mxu1 %v2176_v1 }
 0x8dd   : > { %1952 = vmatpush3.bf16.msra.mxu1 %v2064_v56 }
 0x993   : > { %v1171_v3 = vpop.f32.mrb[16].mxu1 }
 0x994   : > { %v1977_v58 = vadd.f32 %v1706_v57, %v1171_v3  ;;  %v1915_v59 = vpop.f32.mrb[17].mxu1 }
 0x995   : > { %v1174_v60 = vpop.f32.mrb[18].mxu1 }
 0x996   : > { %v1180_v61 = vmax.f32 %v1977_v58, 0.0  ;;  %v1978_v62 = vadd.f32 %v1706_v57, %v1174_v60  ;;  %v1916_v63 = vpop.f32.mrb[19].mxu1 }
 0x998   : > { %v1182_v0 = vmul.f32 %v2454_v21, %v1180_v61  ;;  %v1181_v2 = vmax.f32 %v1978_v62, 0.0 }
 0x99a   : > { %v1186_v4 = vrot.slane %v1182_v0, 7  ;;  %v1183_v5 = vmul.f32 %v2463_v26, %v1181_v2 }
 0x99c   : > { %v1187_v6 = vrot.slane %v1183_v5, 7  ;;  %v1192_v7 = vsel %vm955_vm6, 0.0, %v1186_v4 }
 0x99e   : > { %v1188_v8 = vsel %vm955_vm6, %v1186_v4, %v1187_v6  ;;  %v1193_v9 = vsel %vm955_vm6, %v1187_v6, 0.0 }
 0x99f   : > { %v1218_v11 = vpack.c.bf16 %v1188_v8, %v1192_v7  ;;  %v1735_v13 = vpack.c.bf16 %v1188_v8, %v1186_v4  ;;  %v1327_v14 = vpack.c.bf16 %v1193_v9, %v1193_v9  ;;  %v1785_v9 = vld [vmem:[%s2668_s12] ss:$0 sm:$0xff] }
 0x9a1   : > { %v1336_v17 = vshll.u32 %v1327_v14, 16  ;;  %v1452_v19 = vrot.slane %v1327_v14, 1  ;;  %1934 = vmatmul.mubr.msk.bf16.vlgmr.msra.gmra.mrb[12].mxu0 %vm1734_vm11, %v1735_v13  ;;  %v1331_v20 = vshll.u32 %v1218_v11, 16  ;;  %v1451_v23 = vrot.slane %v1218_v11, 1 }
 0x9a2   : > { %1958 = vmatpush3.bf16.msra.mxu0 %v2063_v10  ;;  %1973 = vmatprep.mubr.msk.bf16.mxu0 %vm2177_vm0, %v2176_v1  ;;  %v1329_v24 = vshrl.u32 %v1218_v11, 16  ;;  %v1786_v11 = vld [vmem:[%s2669_s13] ss:$0 sm:$0xff] }
 0x9a3   : > { %1959 = vmatprep.subr.bf16.mxu0 %v2176_v1  ;;  %v1333_v15 = vrot.slane %v1331_v20, 1  ;;  %v1453_v12 = vsel %vm1118_vm8, %v1451_v23, %v1452_v19  ;;  %v1338_v29 = vrot.slane %v1336_v17, 1 }
 0x9a5   : > { %v1334_v28 = vor.u32 %v1333_v15, %v1329_v24 }
 0x9a6   : > { %1960 = vmatpush3.bf16.msra.mxu0 %v2065_v22 }
 0x9a7   : > { %v1339_v31 = vsel %vm1041_vm7, %v1334_v28, %v1338_v29  ;;  %1961 = vmatprep.subr.bf16.mxu0 %v2176_v1 }
 0x9a8   : > { %1954 = vmatmul.mubr.bf16.vlgmr.msra.gmra.mrb[20].mxu1 %v1339_v31 }
 0x9aa   : > { %1962 = vmatpush3.bf16.msra.mxu0 %v2066_v30 }
 0x9ab   : > { %1963 = vmatprep.subr.bf16.mxu0 %v2176_v1 }
 0x9ae   : > { %1964 = vmatpush3.bf16.msra.mxu0 %v2067_v16 }
 0x9af   : > { %1965 = vmatprep.subr.bf16.mxu0 %v2176_v1 }
 0x9b2   : > { %1966 = vmatpush3.bf16.msra.mxu0 %v2068_v18 }
 0x9b3   : > { %1967 = vmatprep.subr.bf16.mxu0 %v2176_v1 }
 0x9b6   : > { %1968 = vmatpush3.bf16.msra.mxu0 %v2069_v32 }
 0x9b7   : > { %1969 = vmatprep.subr.bf16.mxu0 %v2176_v1 }
 0x9ba   : > { %1970 = vmatpush3.bf16.msra.mxu0 %v2070_v33 }
 0x9bb   : > { %1971 = vmatprep.subr.bf16.mxu0 %v2176_v1 }
 0x9be   : > { %1972 = vmatpush3.bf16.msra.mxu0 %v2071_v34 }
 0x9c1   : > { %1974 = vmatmul.mubr.bf16.vlgmr.msra.gmra.mrb[16].mxu0 %v1453_v12 }
 0xa74   : > { %v1301_v35 = vpop.f32.mrb[12].mxu0 }
 0xa75   : > { %v1935_v36 = vpop.f32.mrb[13].mxu0  ;;  %v1308_v40 = vadd.f32 %v1724_v38, %v1301_v35 }
 0xa76   : > { %v1304_v37 = vpop.f32.mrb[14].mxu0 }
 0xa77   : > { %v1936_v39 = vpop.f32.mrb[15].mxu0  ;;  %v1309_v42 = vadd.f32 %v1724_v38, %v1304_v37 }
 0xa7b   : > { %v1423_v41 = vpop.f32.mrb[20].mxu1 }
 0xa7c   : > { %v1430_v43 = vadd.f32 %v1423_v41, %v1308_v40  ;;  %v1955_v44 = vpop.f32.mrb[21].mxu1 }
 0xa7d   : > { %v1426_v45 = vpop.f32.mrb[22].mxu1 }
 0xa7e   : > { %v1431_v46 = vadd.f32 %v1426_v45, %v1309_v42  ;;  %v1956_v47 = vpop.f32.mrb[23].mxu1 }
 0xa94   : > { %v1537_v48 = vpop.f32.mrb[16].mxu0 }
 0xa95   : > { %v1544_v1 = vadd.f32 %v1537_v48, %v1430_v43  ;;  %v1975_v49 = vpop.f32.mrb[17].mxu0 }
 0xa96   : > { %v1540_v50 = vpop.f32.mrb[18].mxu0 }
 0xa97   : > { %v1545_v51 = vadd.f32 %v1540_v50, %v1431_v46  ;;  %v1976_v52 = vpop.f32.mrb[19].mxu0  ;;  %v1546_v53 = vadd.f32 %v1544_v1, %v2457_v25 }
 0xa99   : > { %v1550_v54 = vsel %vm494_vm1, %v1546_v53, 0.0  ;;  %v1547_v55 = vadd.f32 %v1545_v51, %v2466_v27 }
 0xa9a   : > { %1551 = vadd.xlane.f32.xlu1 %v1550_v54 }
 0xa9b   : > { %v1553_v56 = vsel %vm494_vm1, %v1547_v55, 0.0 }
 0xa9e   : > { %1554 = vadd.xlane.f32.xlu1 %v1553_v56 }
 0xb27   : > { %v1552_v57 = vpop.xlane.xlu1 %1551 }
 0xb28   : > { %v1556_v3 = vmul.f32 0.03125, %v1552_v57 }
 0xb2a   : > { %v1558_v58 = vsub.f32 %v1546_v53, %v1556_v3 }
 0xb2b   : > { %v1555_v59 = vpop.xlane.xlu1 %1554 }
 0xb2c   : > { %v1557_v60 = vmul.f32 0.03125, %v1555_v59  ;;  %v1560_v61 = vmul.f32 %v1558_v58, %v1558_v58 }
 0xb2e   : > { %v1559_v62 = vsub.f32 %v1547_v55, %v1557_v60  ;;  %v1562_v63 = vsel %vm494_vm1, %v1560_v61, 0.0 }
 0xb2f   : > { %1563 = vadd.xlane.f32.xlu1 %v1562_v63 }
 0xb30   : > { %v1561_v25 = vmul.f32 %v1559_v62, %v1559_v62 }
 0xb32   : > { %v1565_v0 = vsel %vm494_vm1, %v1561_v25, 0.0 }
 0xb33   : > { %1566 = vadd.xlane.f32.xlu1 %v1565_v0 }
 0xbbc   : > { %v1564_v27 = vpop.xlane.xlu1 %1563 }
 0xbbd   : > { %v1568_v2 = vmul.f32 0.03125, %v1564_v27 }
 0xbbf   : > { %v1570_v4 = vadd.f32 1e-05, %v1568_v2 }
 0xbc0   : > { %v1567_v5 = vpop.xlane.xlu1 %1566 }
 0xbc1   : > { %2093 = vrsqrt.f32 %v1570_v4  ;;  %v1569_v6 = vmul.f32 0.03125, %v1567_v5 }
 0xbc3   : > { %v1571_v7 = vadd.f32 1e-05, %v1569_v6 }
 0xbc5   : > { %2095 = vrsqrt.f32 %v1571_v7 }
 0xbcb   : > { %v2094_v8 = vpop.eup %2093 }
 0xbcc   : > { %v1574_v10 = vmul.f32 %v2094_v8, %v1558_v58 }
 0xbce   : > { %v1582_v13 = vmul.f32 %v1785_v9, %v1574_v10 }
 0xbcf   : > { %v2096_v14 = vpop.eup %2095 }
 0xbd0   : > { %v1590_v17 = vadd.f32 %v1786_v11, %v1582_v13  ;;  %v1575_v19 = vmul.f32 %v2096_v14, %v1559_v62 }
 0xbd2   : > { %v1583_v20 = vmul.f32 %v1785_v9, %v1575_v19  ;;  %v1592_v22 = vmul.f32 %v2454_v21, %v1590_v17 }
 0xbd4   : > { %v1591_v23 = vadd.f32 %v1786_v11, %v1583_v20  ;;  %v1795_v24 = vpack.c.bf16 %v1592_v22, %v1592_v22 }
 0xbd6   : > { %v1593_v15 = vmul.f32 %v2463_v26, %v1591_v23  ;;  %1603 = vst.msk [vmem:[%s440_s16] sm:$0xf] %vm1602_vm12, %v1795_v24 }
 0xbd8   : > { %v1796_v12 = vpack.c.bf16 %v1593_v15, %v1593_v15 }
 0xbda   : > { %1604 = vst.msk [vmem:[%s440_s16 + $0x4] sm:$0xf] %vm1602_vm12, %v1796_v12 }
 0xbdb   : > { %2122 = shalt.err (!%p2119_p8)
}
 0xbdc   : > { %s2123_s29 = scalar_lea.hbm %s2609_s25, 128  ;;  %s2127_s24 = scalar_lea.hbm %s2670_s14, 256 }
 0xbdd   : > { %p2124_p9 = scmp.ne.s32.totalorder %s2609_s25, %s2123_s29  ;;  %p2128_p0 = scmp.lt.u32.totalorder %s2609_s25, %s2670_s14 }
 0xbde   : > { %p2129_p1 = scmp.lt.u32.totalorder %s2127_s24, %s2123_s29  ;;  %p2131_p3 = scmp.lt.u32.totalorder %s2123_s29, %s2609_s25 }
 0xbdf   : > { %p2125_p12 = pnand %p2124_p9, %p2303_p10 }
 0xbe0   : > { %p2130_p2 = por %p2129_p1, %p2128_p0 }
 0xbe1   : > { %p2126_p13 = pneg %p2125_p12 }
 0xbe2   : > { %p2132_p4 = por %p2131_p3, %p2130_p2 }
 0xbe4   : > { %p2133_p5 = pnand %p2132_p4, %p2126_p13 }
 0xbe6   : > { %2136 = shalt.err (!%p2133_p5)
}
 0xbe7   : > { %s2186_s21 = smov 4   ;;  %s2678_s22 = smov 64  }
 0xbe8   : > { %1987 = dma.vmem_to_hbm [thread:$0]  (%p2303_p10), %s2611_s17, 128, %s2609_s25, %s2613_s1, %s2678_s22, %s2678_s22, %s2186_s21  }
 0xbe9 PF: > { %p1993_p6 = scmp.ge.s32.totalorder %s2173_s20, 2  ;;  %s1634_s15 = sand.u32 1, %s2161_s18  }
 0xbea   : > { %s1635_s29 = scalar_lea.sflag [#allocation5], %s1634_s15 }
 0xbeb   : > { %p1990_p7 = pnand %p1993_p6, %p2307_p11 }
 0xbed   : > { %2156 = dma.done.wait (!%p1990_p7), %s1635_s29, 128  }
 0xbee   : > { %2158 = vsyncadd (!%p1990_p7), %s1635_s29, 4294967168  ;;  %p30_p8 = scmp.ge.s32.totalorder %s2290_s23, 4   ;;  %s2679_s18 = smov %s2165_s19 }
 0xbef   : > { %s2680_s19 = smov %s2169_s0  ;;  %s2681_s0 = smov %s2301_s26 }
 0xbf0   : > { %s2682_s20 = smov %s2290_s23  ;;  %32 = sbr.rel (!%p30_p8) target bundleno = 19 (0x13), region = 111 }
 0xbf7   :  { %1640 = vsyncpa [#allocation5], 1 }
 0xbf8   :  { %1642 = vsyncpa [#allocation5 + $0x1], 1 }

</bundles_post_ra>
